<compile_context>
chip_gen: v7x
topology: tpu7x:2x2x1
jax: 0.10.0
libtpu: 0.0.40
codegen_flags: <defaults>
</compile_context>

<pallas_src>
import functools

import jax
import jax.numpy as jnp
from jax.experimental import pallas as pl
from jax.experimental.pallas import tpu as pltpu

LN_EPS = 1e-5
_VEC_ROWS_PER_LAYER = 8   # b_in, b_out, ln1_g, ln1_b, b1, b2, ln2_g, ln2_b
_VEC_LANES = 128


def _transformer_kernel(tok_ref, emb_ref, w_in_ref, w_out_ref, w1_ref, w2_ref,
                        vec_ref, o_ref, *, nhead, num_layers, batch, seq):
    vocab, D = emb_ref.shape
    F = w1_ref.shape[2]
    B, S, H = batch, seq, nhead
    Dh = D // H
    N = B * S
    scale = 1.0 / (float(Dh) ** 0.5)

    # ---------- Fused embedding gather: exact one-hot @ table on the MXU ----------
    tok = tok_ref[...]                                                    # (N, 1) int32
    lanes = jax.lax.broadcasted_iota(jnp.int32, (N, vocab), 1)
    onehot = jnp.where(tok == lanes, 1.0, 0.0)                            # (N, vocab) f32
    h = jnp.dot(onehot, emb_ref[...], preferred_element_type=jnp.float32)  # (N, D)

    def layer_norm(x, gamma, beta):
        mu = jnp.mean(x, axis=-1, keepdims=True)
        var = jnp.mean((x - mu) ** 2, axis=-1, keepdims=True)
        return (x - mu) * jax.lax.rsqrt(var + LN_EPS) * gamma + beta

    # Static unrolled layer loop is fine at L=2.
    # TODO(synk): for larger L move the layer loop to grid=(L,) ("arbitrary")
    # with the activation carried in VMEM scratch + Buffered(2) weight streaming.
    for l in range(num_layers):
        r = l * _VEC_ROWS_PER_LAYER
        b_in  = vec_ref[r + 0:r + 1, 0:3 * D]      # (1, 3D), head-major column order
        b_out = vec_ref[r + 1:r + 2, 0:D]
        ln1_g = vec_ref[r + 2:r + 3, 0:D]
        ln1_b = vec_ref[r + 3:r + 4, 0:D]
        b1    = vec_ref[r + 4:r + 5, 0:F]
        b2    = vec_ref[r + 5:r + 6, 0:D]
        ln2_g = vec_ref[r + 6:r + 7, 0:D]
        ln2_b = vec_ref[r + 7:r + 8, 0:D]

        # ---------------- Multi-head self-attention (heads fused into batch) ----------------
        qkv = jnp.dot(h, w_in_ref[l], preferred_element_type=jnp.float32) + b_in   # (N, 3D)
        qkv3 = qkv.reshape(B, S, 3 * D)
        # w_in columns are stored head-major ([q_h | k_h | v_h] per head), so
        # folding heads into the batch axis needs only H contiguous lane slices.
        qkv_hb = jnp.concatenate(
            [qkv3[:, :, hd * 3 * Dh:(hd + 1) * 3 * Dh] for hd in range(H)],
            axis=0)                                                                 # (H*B, S, 3Dh)
        q = qkv_hb[:, :, 0:Dh]
        k = qkv_hb[:, :, Dh:2 * Dh]
        v = qkv_hb[:, :, 2 * Dh:3 * Dh]

        s = jnp.einsum('gsd,gtd->gst', q, k,
                       preferred_element_type=jnp.float32) * scale                 # (H*B, S, S)
        s = s - jnp.max(s, axis=-1, keepdims=True)
        p = jnp.exp(s)
        p = p / jnp.sum(p, axis=-1, keepdims=True)          # exact softmax (parity with torch)
        ctx_hb = jnp.einsum('gst,gtd->gsd', p, v,
                            preferred_element_type=jnp.float32)                    # (H*B, S, Dh)
        # Un-fold heads back onto the feature (lane) axis in PyTorch head order.
        ctx = jnp.concatenate(
            [ctx_hb[hd * B:(hd + 1) * B] for hd in range(H)], axis=-1)             # (B, S, D)
        ctx = ctx.reshape(N, D)

        attn = jnp.dot(ctx, w_out_ref[l], preferred_element_type=jnp.float32) + b_out

        # ---------------- Post-norm residual blocks ----------------
        h1 = layer_norm(h + attn, ln1_g, ln1_b)
        f = jnp.maximum(
            jnp.dot(h1, w1_ref[l], preferred_element_type=jnp.float32) + b1, 0.0)
        f = jnp.dot(f, w2_ref[l], preferred_element_type=jnp.float32) + b2
        h = layer_norm(h1 + f, ln2_g, ln2_b)

    # ---------------- Head ----------------
    # mean over seq -> fc -> mean over batch (keepdim) == fc(mean over all (b, s))
    # because fc is affine and every sequence has the same length.
    fc_row = num_layers * _VEC_ROWS_PER_LAYER
    fc_w = vec_ref[fc_row:fc_row + 1, 0:D]                  # (1, D)
    fc_b = vec_ref[fc_row:fc_row + 1, D:D + 1]              # (1, 1)
    pooled = jnp.mean(h, axis=0, keepdims=True)             # (1, D)
    o_ref[...] = jnp.sum(pooled * fc_w, axis=-1, keepdims=True) + fc_b


def _vmem_spec():
    return pl.BlockSpec(memory_space=pltpu.MemorySpace.VMEM)


def _cost_estimate(params, B, S, nhead):
    L, D, _ = params["w_out"].shape
    F = params["w1"].shape[2]
    V = params["embedding"].shape[0]
    N = B * S
    Dh = D // nhead
    flops = 2 * N * V * D                                   # one-hot embedding matmul
    flops += L * (2 * N * D * 3 * D                         # qkv projection
                  + 2 * 2 * nhead * B * S * S * Dh          # scores + context
                  + 2 * N * D * D                           # out projection
                  + 4 * N * D * F)                          # feed-forward
    transcendentals = L * nhead * B * S * S + 4 * L * N     # exp + rsqrt
    bytes_accessed = (sum(int(v.size) * v.dtype.itemsize for v in params.values())
                      + N * 4 + 4)
    return pl.CostEstimate(flops=int(flops), transcendentals=int(transcendentals),
                           bytes_accessed=int(bytes_accessed))


def forward(params, tokens, nhead):
    B, S = tokens.shape
    D = params["embedding"].shape[1]
    assert D % nhead == 0
    num_layers = params["w_in"].shape[0]
    tok = tokens.reshape(B * S, 1).astype(jnp.int32)

    args = (tok, params["embedding"], params["w_in"], params["w_out"],
            params["w1"], params["w2"], params["vecs"])

    kernel = functools.partial(_transformer_kernel, nhead=nhead,
                               num_layers=num_layers, batch=B, seq=S)
    # Single ungridded program: at B*S=16, D=32 the net is launch/DMA-bound and
    # everything fits trivially in VMEM, so full fusion wins on v5e/v6e/v7x.
    # TODO(synk): when batch/heads grow, add a grid axis over batch with
    # dimension_semantics=("parallel",) so the second v7x TensorCore is used,
    # and re-derive the VMEM budget against v7x's 64 MiB.
    return pl.pallas_call(
        kernel,
        out_shape=jax.ShapeDtypeStruct((1, 1), jnp.float32),
        in_specs=[_vmem_spec() for _ in args],
        out_specs=_vmem_spec(),
        cost_estimate=_cost_estimate(params, B, S, nhead),
    )(*args)


def init_params(key, vocab_size, d_model, nhead, num_layers, dim_feedforward):
    D, F, L = d_model, dim_feedforward, num_layers
    # Packing constraints for the small-vector operand (one 128-lane row each).
    assert 3 * D <= _VEC_LANES and F <= _VEC_LANES and D + 1 <= _VEC_LANES
    assert D % nhead == 0
    keys = jax.random.split(key, 10)
    params = {
        # Matrices are stored in MXU-friendly (K, N) orientation, stacked over
        # layers.  w_in's output columns are head-major ([q_h | k_h | v_h] per
        # head) — a pure column permutation of PyTorch's in_proj weight — so
        # the kernel folds heads into the batch axis with contiguous slices.
        "embedding": jax.random.normal(keys[0], (vocab_size, D), jnp.float32) * 0.02,
        "w_in":  jax.random.normal(keys[1], (L, D, 3 * D), jnp.float32) * 0.05,
        "w_out": jax.random.normal(keys[2], (L, D, D), jnp.float32) * 0.05,
        "w1":    jax.random.normal(keys[3], (L, D, F), jnp.float32) * 0.05,
        "w2":    jax.random.normal(keys[4], (L, F, D), jnp.float32) * 0.05,
    }
    # All 10 small vectors packed into ONE VMEM operand: (L*8 + 1, 128),
    # one 128-lane row per vector (last row = fc weight + fc bias).
    vecs = jnp.zeros((L * _VEC_ROWS_PER_LAYER + 1, _VEC_LANES), jnp.float32)
    b_in  = jax.random.normal(keys[5], (L, 3 * D), jnp.float32) * 0.01
    b_out = jax.random.normal(keys[6], (L, D), jnp.float32) * 0.01
    b1    = jax.random.normal(keys[7], (L, F), jnp.float32) * 0.01
    b2    = jax.random.normal(keys[8], (L, D), jnp.float32) * 0.01
    ones_d = jnp.ones((D,), jnp.float32)
    for l in range(L):
        r = l * _VEC_ROWS_PER_LAYER
        vecs = vecs.at[r + 0, :3 * D].set(b_in[l])
        vecs = vecs.at[r + 1, :D].set(b_out[l])
        vecs = vecs.at[r + 2, :D].set(ones_d)      # ln1 gamma (ln1 beta row stays 0)
        vecs = vecs.at[r + 4, :F].set(b1[l])
        vecs = vecs.at[r + 5, :D].set(b2[l])
        vecs = vecs.at[r + 6, :D].set(ones_d)      # ln2 gamma (ln2 beta row stays 0)
    kfw, kfb = jax.random.split(keys[9])
    fc_row = L * _VEC_ROWS_PER_LAYER
    vecs = vecs.at[fc_row, :D].set(jax.random.normal(kfw, (D,), jnp.float32) * 0.05)
    vecs = vecs.at[fc_row, D].set(jax.random.normal(kfb, (), jnp.float32) * 0.01)
    params["vecs"] = vecs
    return params


if __name__ == "__main__":
    vocab_size, d_model, nhead, num_layers, dim_feedforward = 50, 32, 4, 2, 64
    batch, seq = 2, 8

    key = jax.random.PRNGKey(0)
    pkey, tkey = jax.random.split(key)
    params = init_params(pkey, vocab_size, d_model, nhead, num_layers, dim_feedforward)
    tokens = jax.random.randint(tkey, (batch, seq), 0, vocab_size, dtype=jnp.int32)

    out = forward(params, tokens, nhead)
    out = jax.block_until_ready(out)
    assert out.shape == (1, 1) and out.dtype == jnp.float32
    assert bool(jnp.isfinite(out).all())
    print("KERNEL_OK")
</pallas_src>

<mosaic_0001>
module attributes {stable_mosaic.version = 11 : i64} {
  func.func @_transformer_kernel(%arg0: memref<16x1xi32, #tpu.memory_space<vmem>>, %arg1: memref<50x32xf32, #tpu.memory_space<vmem>>, %arg2: memref<2x32x96xf32, #tpu.memory_space<vmem>>, %arg3: memref<2x32x32xf32, #tpu.memory_space<vmem>>, %arg4: memref<2x32x64xf32, #tpu.memory_space<vmem>>, %arg5: memref<2x64x32xf32, #tpu.memory_space<vmem>>, %arg6: memref<17x128xf32, #tpu.memory_space<vmem>>, %arg7: memref<1x1xf32, #tpu.memory_space<vmem>>) attributes {dimension_semantics = [], scalar_prefetch = 0 : i64, scratch_operands = 0 : i64, tpu.core_type = #tpu.core_type<tc>} {
    %c0 = arith.constant 0 : index
    %c0_0 = arith.constant 0 : index
    %0 = vector.load %arg0[%c0, %c0_0] : memref<16x1xi32, #tpu.memory_space<vmem>>, vector<16x1xi32>
    %1 = tpu.iota {dimensions = array<i32: 1>} : vector<16x50xi32>
    %2 = vector.broadcast %0 : vector<16x1xi32> to vector<16x50xi32>
    %3 = arith.cmpi eq, %2, %1 : vector<16x50xi32>
    %cst = arith.constant 1.000000e+00 : f32
    %cst_1 = arith.constant 0.000000e+00 : f32
    %4 = vector.broadcast %cst : f32 to vector<16x50xf32>
    %5 = vector.broadcast %cst_1 : f32 to vector<16x50xf32>
    %6 = arith.select %3, %4, %5 : vector<16x50xi1>, vector<16x50xf32>
    %c0_2 = arith.constant 0 : index
    %c0_3 = arith.constant 0 : index
    %7 = vector.load %arg1[%c0_2, %c0_3] : memref<50x32xf32, #tpu.memory_space<vmem>>, vector<50x32xf32>
    %cst_4 = arith.constant dense<0.000000e+00> : vector<16x32xf32>
    %8 = tpu.matmul %6, %7, %cst_4 {dimension_numbers = #tpu.dot_dimension_numbers<[1], [0], [0], [1], [0, 0, 1, 1], [], []>} : vector<16x50xf32>, vector<50x32xf32>, vector<16x32xf32> -> vector<16x32xf32>
    %c0_5 = arith.constant 0 : index
    %c0_6 = arith.constant 0 : index
    %9 = vector.load %arg6[%c0_5, %c0_6] : memref<17x128xf32, #tpu.memory_space<vmem>>, vector<1x96xf32>
    %c1 = arith.constant 1 : index
    %c0_7 = arith.constant 0 : index
    %10 = vector.load %arg6[%c1, %c0_7] : memref<17x128xf32, #tpu.memory_space<vmem>>, vector<1x32xf32>
    %c2 = arith.constant 2 : index
    %c0_8 = arith.constant 0 : index
    %11 = vector.load %arg6[%c2, %c0_8] : memref<17x128xf32, #tpu.memory_space<vmem>>, vector<1x32xf32>
    %c3 = arith.constant 3 : index
    %c0_9 = arith.constant 0 : index
    %12 = vector.load %arg6[%c3, %c0_9] : memref<17x128xf32, #tpu.memory_space<vmem>>, vector<1x32xf32>
    %c4 = arith.constant 4 : index
    %c0_10 = arith.constant 0 : index
    %13 = vector.load %arg6[%c4, %c0_10] : memref<17x128xf32, #tpu.memory_space<vmem>>, vector<1x64xf32>
    %c5 = arith.constant 5 : index
    %c0_11 = arith.constant 0 : index
    %14 = vector.load %arg6[%c5, %c0_11] : memref<17x128xf32, #tpu.memory_space<vmem>>, vector<1x32xf32>
    %c6 = arith.constant 6 : index
    %c0_12 = arith.constant 0 : index
    %15 = vector.load %arg6[%c6, %c0_12] : memref<17x128xf32, #tpu.memory_space<vmem>>, vector<1x32xf32>
    %c7 = arith.constant 7 : index
    %c0_13 = arith.constant 0 : index
    %16 = vector.load %arg6[%c7, %c0_13] : memref<17x128xf32, #tpu.memory_space<vmem>>, vector<1x32xf32>
    %c0_14 = arith.constant 0 : index
    %c0_15 = arith.constant 0 : index
    %c0_16 = arith.constant 0 : index
    %17 = vector.load %arg2[%c0_14, %c0_15, %c0_16] : memref<2x32x96xf32, #tpu.memory_space<vmem>>, vector<1x32x96xf32>
    %18 = vector.shape_cast %17 : vector<1x32x96xf32> to vector<32x96xf32>
    %cst_17 = arith.constant dense<0.000000e+00> : vector<16x96xf32>
    %19 = tpu.matmul %8, %18, %cst_17 {dimension_numbers = #tpu.dot_dimension_numbers<[1], [0], [0], [1], [0, 0, 1, 1], [], []>} : vector<16x32xf32>, vector<32x96xf32>, vector<16x96xf32> -> vector<16x96xf32>
    %20 = vector.broadcast %9 : vector<1x96xf32> to vector<16x96xf32>
    %21 = arith.addf %19, %20 : vector<16x96xf32>
    %22 = vector.shape_cast %21 : vector<16x96xf32> to vector<2x8x96xf32>
    %23 = vector.extract_strided_slice %22 {offsets = [0, 0, 0], sizes = [2, 8, 24], strides = [1, 1, 1]} : vector<2x8x96xf32> to vector<2x8x24xf32>
    %24 = vector.extract_strided_slice %22 {offsets = [0, 0, 24], sizes = [2, 8, 24], strides = [1, 1, 1]} : vector<2x8x96xf32> to vector<2x8x24xf32>
    %25 = vector.extract_strided_slice %22 {offsets = [0, 0, 48], sizes = [2, 8, 24], strides = [1, 1, 1]} : vector<2x8x96xf32> to vector<2x8x24xf32>
    %26 = vector.extract_strided_slice %22 {offsets = [0, 0, 72], sizes = [2, 8, 24], strides = [1, 1, 1]} : vector<2x8x96xf32> to vector<2x8x24xf32>
    %27 = tpu.concatenate %23, %24, %25, %26 in 0 : vector<2x8x24xf32>, vector<2x8x24xf32>, vector<2x8x24xf32>, vector<2x8x24xf32> -> vector<8x8x24xf32>
    %28 = vector.extract_strided_slice %27 {offsets = [0, 0, 0], sizes = [8, 8, 8], strides = [1, 1, 1]} : vector<8x8x24xf32> to vector<8x8x8xf32>
    %29 = vector.extract_strided_slice %27 {offsets = [0, 0, 8], sizes = [8, 8, 8], strides = [1, 1, 1]} : vector<8x8x24xf32> to vector<8x8x8xf32>
    %30 = vector.extract_strided_slice %27 {offsets = [0, 0, 16], sizes = [8, 8, 8], strides = [1, 1, 1]} : vector<8x8x24xf32> to vector<8x8x8xf32>
    "tpu.trace_start"() <{level = 10 : i32, message = "gsd,gtd->gst"}> : () -> ()
    %cst_18 = arith.constant dense<0.000000e+00> : vector<8x8x8xf32>
    %31 = tpu.matmul %28, %29, %cst_18 {dimension_numbers = #tpu.dot_dimension_numbers<[2], [2], [1], [1], [0, 0, 0, 1, 1, 1], [0], [0]>} : vector<8x8x8xf32>, vector<8x8x8xf32>, vector<8x8x8xf32> -> vector<8x8x8xf32>
    "tpu.trace_stop"() : () -> ()
    %cst_19 = arith.constant 0.353553385 : f32
    %32 = vector.broadcast %cst_19 : f32 to vector<8x8x8xf32>
    %33 = arith.mulf %31, %32 : vector<8x8x8xf32>
    %cst_20 = arith.constant dense<0xFF800000> : vector<8x8xf32>
    %34 = vector.multi_reduction <maximumf>, %33, %cst_20 [2] : vector<8x8x8xf32> to vector<8x8xf32>
    %35 = vector.shape_cast %34 : vector<8x8xf32> to vector<8x8x1xf32>
    %36 = vector.broadcast %35 : vector<8x8x1xf32> to vector<8x8x8xf32>
    %37 = arith.subf %33, %36 : vector<8x8x8xf32>
    %38 = math.exp %37 : vector<8x8x8xf32>
    %cst_21 = arith.constant dense<0.000000e+00> : vector<8x8xf32>
    %39 = vector.multi_reduction <add>, %38, %cst_21 [2] : vector<8x8x8xf32> to vector<8x8xf32>
    %40 = vector.shape_cast %39 : vector<8x8xf32> to vector<8x8x1xf32>
    %41 = vector.broadcast %40 : vector<8x8x1xf32> to vector<8x8x8xf32>
    %42 = arith.divf %38, %41 : vector<8x8x8xf32>
    "tpu.trace_start"() <{level = 10 : i32, message = "gst,gtd->gsd"}> : () -> ()
    %cst_22 = arith.constant dense<0.000000e+00> : vector<8x8x8xf32>
    %43 = tpu.matmul %42, %30, %cst_22 {dimension_numbers = #tpu.dot_dimension_numbers<[2], [1], [1], [2], [0, 0, 0, 1, 1, 2], [0], [0]>} : vector<8x8x8xf32>, vector<8x8x8xf32>, vector<8x8x8xf32> -> vector<8x8x8xf32>
    "tpu.trace_stop"() : () -> ()
    %44 = vector.extract_strided_slice %43 {offsets = [0, 0, 0], sizes = [2, 8, 8], strides = [1, 1, 1]} : vector<8x8x8xf32> to vector<2x8x8xf32>
    %45 = vector.extract_strided_slice %43 {offsets = [2, 0, 0], sizes = [2, 8, 8], strides = [1, 1, 1]} : vector<8x8x8xf32> to vector<2x8x8xf32>
    %46 = vector.extract_strided_slice %43 {offsets = [4, 0, 0], sizes = [2, 8, 8], strides = [1, 1, 1]} : vector<8x8x8xf32> to vector<2x8x8xf32>
    %47 = vector.extract_strided_slice %43 {offsets = [6, 0, 0], sizes = [2, 8, 8], strides = [1, 1, 1]} : vector<8x8x8xf32> to vector<2x8x8xf32>
    %48 = tpu.concatenate %44, %45, %46, %47 in 2 : vector<2x8x8xf32>, vector<2x8x8xf32>, vector<2x8x8xf32>, vector<2x8x8xf32> -> vector<2x8x32xf32>
    %49 = vector.shape_cast %48 : vector<2x8x32xf32> to vector<16x32xf32>
    %c0_23 = arith.constant 0 : index
    %c0_24 = arith.constant 0 : index
    %c0_25 = arith.constant 0 : index
    %50 = vector.load %arg3[%c0_23, %c0_24, %c0_25] : memref<2x32x32xf32, #tpu.memory_space<vmem>>, vector<1x32x32xf32>
    %51 = vector.shape_cast %50 : vector<1x32x32xf32> to vector<32x32xf32>
    %cst_26 = arith.constant dense<0.000000e+00> : vector<16x32xf32>
    %52 = tpu.matmul %49, %51, %cst_26 {dimension_numbers = #tpu.dot_dimension_numbers<[1], [0], [0], [1], [0, 0, 1, 1], [], []>} : vector<16x32xf32>, vector<32x32xf32>, vector<16x32xf32> -> vector<16x32xf32>
    %53 = vector.broadcast %10 : vector<1x32xf32> to vector<16x32xf32>
    %54 = arith.addf %52, %53 : vector<16x32xf32>
    %55 = arith.addf %8, %54 : vector<16x32xf32>
    %cst_27 = arith.constant dense<0.000000e+00> : vector<16xf32>
    %56 = vector.multi_reduction <add>, %55, %cst_27 [1] : vector<16x32xf32> to vector<16xf32>
    %57 = vector.shape_cast %56 : vector<16xf32> to vector<16x1xf32>
    %cst_28 = arith.constant 3.200000e+01 : f32
    %58 = vector.broadcast %cst_28 : f32 to vector<16x1xf32>
    %59 = arith.divf %57, %58 : vector<16x1xf32>
    %60 = vector.broadcast %59 : vector<16x1xf32> to vector<16x32xf32>
    %61 = arith.subf %55, %60 : vector<16x32xf32>
    %62 = arith.mulf %61, %61 : vector<16x32xf32>
    %cst_29 = arith.constant dense<0.000000e+00> : vector<16xf32>
    %63 = vector.multi_reduction <add>, %62, %cst_29 [1] : vector<16x32xf32> to vector<16xf32>
    %64 = vector.shape_cast %63 : vector<16xf32> to vector<16x1xf32>
    %cst_30 = arith.constant 3.200000e+01 : f32
    %65 = vector.broadcast %cst_30 : f32 to vector<16x1xf32>
    %66 = arith.divf %64, %65 : vector<16x1xf32>
    %67 = vector.broadcast %59 : vector<16x1xf32> to vector<16x32xf32>
    %68 = arith.subf %55, %67 : vector<16x32xf32>
    %cst_31 = arith.constant 9.99999974E-6 : f32
    %69 = vector.broadcast %cst_31 : f32 to vector<16x1xf32>
    %70 = arith.addf %66, %69 : vector<16x1xf32>
    %71 = math.rsqrt %70 : vector<16x1xf32>
    %72 = vector.broadcast %71 : vector<16x1xf32> to vector<16x32xf32>
    %73 = arith.mulf %68, %72 : vector<16x32xf32>
    %74 = vector.broadcast %11 : vector<1x32xf32> to vector<16x32xf32>
    %75 = arith.mulf %73, %74 : vector<16x32xf32>
    %76 = vector.broadcast %12 : vector<1x32xf32> to vector<16x32xf32>
    %77 = arith.addf %75, %76 : vector<16x32xf32>
    %c0_32 = arith.constant 0 : index
    %c0_33 = arith.constant 0 : index
    %c0_34 = arith.constant 0 : index
    %78 = vector.load %arg4[%c0_32, %c0_33, %c0_34] : memref<2x32x64xf32, #tpu.memory_space<vmem>>, vector<1x32x64xf32>
    %79 = vector.shape_cast %78 : vector<1x32x64xf32> to vector<32x64xf32>
    %cst_35 = arith.constant dense<0.000000e+00> : vector<16x64xf32>
    %80 = tpu.matmul %77, %79, %cst_35 {dimension_numbers = #tpu.dot_dimension_numbers<[1], [0], [0], [1], [0, 0, 1, 1], [], []>} : vector<16x32xf32>, vector<32x64xf32>, vector<16x64xf32> -> vector<16x64xf32>
    %81 = vector.broadcast %13 : vector<1x64xf32> to vector<16x64xf32>
    %82 = arith.addf %80, %81 : vector<16x64xf32>
    %cst_36 = arith.constant 0.000000e+00 : f32
    %83 = vector.broadcast %cst_36 : f32 to vector<16x64xf32>
    %84 = arith.maximumf %82, %83 : vector<16x64xf32>
    %c0_37 = arith.constant 0 : index
    %c0_38 = arith.constant 0 : index
    %c0_39 = arith.constant 0 : index
    %85 = vector.load %arg5[%c0_37, %c0_38, %c0_39] : memref<2x64x32xf32, #tpu.memory_space<vmem>>, vector<1x64x32xf32>
    %86 = vector.shape_cast %85 : vector<1x64x32xf32> to vector<64x32xf32>
    %cst_40 = arith.constant dense<0.000000e+00> : vector<16x32xf32>
    %87 = tpu.matmul %84, %86, %cst_40 {dimension_numbers = #tpu.dot_dimension_numbers<[1], [0], [0], [1], [0, 0, 1, 1], [], []>} : vector<16x64xf32>, vector<64x32xf32>, vector<16x32xf32> -> vector<16x32xf32>
    %88 = vector.broadcast %14 : vector<1x32xf32> to vector<16x32xf32>
    %89 = arith.addf %87, %88 : vector<16x32xf32>
    %90 = arith.addf %77, %89 : vector<16x32xf32>
    %cst_41 = arith.constant dense<0.000000e+00> : vector<16xf32>
    %91 = vector.multi_reduction <add>, %90, %cst_41 [1] : vector<16x32xf32> to vector<16xf32>
    %92 = vector.shape_cast %91 : vector<16xf32> to vector<16x1xf32>
    %cst_42 = arith.constant 3.200000e+01 : f32
    %93 = vector.broadcast %cst_42 : f32 to vector<16x1xf32>
    %94 = arith.divf %92, %93 : vector<16x1xf32>
    %95 = vector.broadcast %94 : vector<16x1xf32> to vector<16x32xf32>
    %96 = arith.subf %90, %95 : vector<16x32xf32>
    %97 = arith.mulf %96, %96 : vector<16x32xf32>
    %cst_43 = arith.constant dense<0.000000e+00> : vector<16xf32>
    %98 = vector.multi_reduction <add>, %97, %cst_43 [1] : vector<16x32xf32> to vector<16xf32>
    %99 = vector.shape_cast %98 : vector<16xf32> to vector<16x1xf32>
    %cst_44 = arith.constant 3.200000e+01 : f32
    %100 = vector.broadcast %cst_44 : f32 to vector<16x1xf32>
    %101 = arith.divf %99, %100 : vector<16x1xf32>
    %102 = vector.broadcast %94 : vector<16x1xf32> to vector<16x32xf32>
    %103 = arith.subf %90, %102 : vector<16x32xf32>
    %cst_45 = arith.constant 9.99999974E-6 : f32
    %104 = vector.broadcast %cst_45 : f32 to vector<16x1xf32>
    %105 = arith.addf %101, %104 : vector<16x1xf32>
    %106 = math.rsqrt %105 : vector<16x1xf32>
    %107 = vector.broadcast %106 : vector<16x1xf32> to vector<16x32xf32>
    %108 = arith.mulf %103, %107 : vector<16x32xf32>
    %109 = vector.broadcast %15 : vector<1x32xf32> to vector<16x32xf32>
    %110 = arith.mulf %108, %109 : vector<16x32xf32>
    %111 = vector.broadcast %16 : vector<1x32xf32> to vector<16x32xf32>
    %112 = arith.addf %110, %111 : vector<16x32xf32>
    %c8 = arith.constant 8 : index
    %c0_46 = arith.constant 0 : index
    %113 = vector.load %arg6[%c8, %c0_46] : memref<17x128xf32, #tpu.memory_space<vmem>>, vector<1x96xf32>
    %c9 = arith.constant 9 : index
    %c0_47 = arith.constant 0 : index
    %114 = vector.load %arg6[%c9, %c0_47] : memref<17x128xf32, #tpu.memory_space<vmem>>, vector<1x32xf32>
    %c10 = arith.constant 10 : index
    %c0_48 = arith.constant 0 : index
    %115 = vector.load %arg6[%c10, %c0_48] : memref<17x128xf32, #tpu.memory_space<vmem>>, vector<1x32xf32>
    %c11 = arith.constant 11 : index
    %c0_49 = arith.constant 0 : index
    %116 = vector.load %arg6[%c11, %c0_49] : memref<17x128xf32, #tpu.memory_space<vmem>>, vector<1x32xf32>
    %c12 = arith.constant 12 : index
    %c0_50 = arith.constant 0 : index
    %117 = vector.load %arg6[%c12, %c0_50] : memref<17x128xf32, #tpu.memory_space<vmem>>, vector<1x64xf32>
    %c13 = arith.constant 13 : index
    %c0_51 = arith.constant 0 : index
    %118 = vector.load %arg6[%c13, %c0_51] : memref<17x128xf32, #tpu.memory_space<vmem>>, vector<1x32xf32>
    %c14 = arith.constant 14 : index
    %c0_52 = arith.constant 0 : index
    %119 = vector.load %arg6[%c14, %c0_52] : memref<17x128xf32, #tpu.memory_space<vmem>>, vector<1x32xf32>
    %c15 = arith.constant 15 : index
    %c0_53 = arith.constant 0 : index
    %120 = vector.load %arg6[%c15, %c0_53] : memref<17x128xf32, #tpu.memory_space<vmem>>, vector<1x32xf32>
    %c1_54 = arith.constant 1 : index
    %c0_55 = arith.constant 0 : index
    %c0_56 = arith.constant 0 : index
    %121 = vector.load %arg2[%c1_54, %c0_55, %c0_56] : memref<2x32x96xf32, #tpu.memory_space<vmem>>, vector<1x32x96xf32>
    %122 = vector.shape_cast %121 : vector<1x32x96xf32> to vector<32x96xf32>
    %cst_57 = arith.constant dense<0.000000e+00> : vector<16x96xf32>
    %123 = tpu.matmul %112, %122, %cst_57 {dimension_numbers = #tpu.dot_dimension_numbers<[1], [0], [0], [1], [0, 0, 1, 1], [], []>} : vector<16x32xf32>, vector<32x96xf32>, vector<16x96xf32> -> vector<16x96xf32>
    %124 = vector.broadcast %113 : vector<1x96xf32> to vector<16x96xf32>
    %125 = arith.addf %123, %124 : vector<16x96xf32>
    %126 = vector.shape_cast %125 : vector<16x96xf32> to vector<2x8x96xf32>
    %127 = vector.extract_strided_slice %126 {offsets = [0, 0, 0], sizes = [2, 8, 24], strides = [1, 1, 1]} : vector<2x8x96xf32> to vector<2x8x24xf32>
    %128 = vector.extract_strided_slice %126 {offsets = [0, 0, 24], sizes = [2, 8, 24], strides = [1, 1, 1]} : vector<2x8x96xf32> to vector<2x8x24xf32>
    %129 = vector.extract_strided_slice %126 {offsets = [0, 0, 48], sizes = [2, 8, 24], strides = [1, 1, 1]} : vector<2x8x96xf32> to vector<2x8x24xf32>
    %130 = vector.extract_strided_slice %126 {offsets = [0, 0, 72], sizes = [2, 8, 24], strides = [1, 1, 1]} : vector<2x8x96xf32> to vector<2x8x24xf32>
    %131 = tpu.concatenate %127, %128, %129, %130 in 0 : vector<2x8x24xf32>, vector<2x8x24xf32>, vector<2x8x24xf32>, vector<2x8x24xf32> -> vector<8x8x24xf32>
    %132 = vector.extract_strided_slice %131 {offsets = [0, 0, 0], sizes = [8, 8, 8], strides = [1, 1, 1]} : vector<8x8x24xf32> to vector<8x8x8xf32>
    %133 = vector.extract_strided_slice %131 {offsets = [0, 0, 8], sizes = [8, 8, 8], strides = [1, 1, 1]} : vector<8x8x24xf32> to vector<8x8x8xf32>
    %134 = vector.extract_strided_slice %131 {offsets = [0, 0, 16], sizes = [8, 8, 8], strides = [1, 1, 1]} : vector<8x8x24xf32> to vector<8x8x8xf32>
    "tpu.trace_start"() <{level = 10 : i32, message = "gsd,gtd->gst"}> : () -> ()
    %cst_58 = arith.constant dense<0.000000e+00> : vector<8x8x8xf32>
    %135 = tpu.matmul %132, %133, %cst_58 {dimension_numbers = #tpu.dot_dimension_numbers<[2], [2], [1], [1], [0, 0, 0, 1, 1, 1], [0], [0]>} : vector<8x8x8xf32>, vector<8x8x8xf32>, vector<8x8x8xf32> -> vector<8x8x8xf32>
    "tpu.trace_stop"() : () -> ()
    %cst_59 = arith.constant 0.353553385 : f32
    %136 = vector.broadcast %cst_59 : f32 to vector<8x8x8xf32>
    %137 = arith.mulf %135, %136 : vector<8x8x8xf32>
    %cst_60 = arith.constant dense<0xFF800000> : vector<8x8xf32>
    %138 = vector.multi_reduction <maximumf>, %137, %cst_60 [2] : vector<8x8x8xf32> to vector<8x8xf32>
    %139 = vector.shape_cast %138 : vector<8x8xf32> to vector<8x8x1xf32>
    %140 = vector.broadcast %139 : vector<8x8x1xf32> to vector<8x8x8xf32>
    %141 = arith.subf %137, %140 : vector<8x8x8xf32>
    %142 = math.exp %141 : vector<8x8x8xf32>
    %cst_61 = arith.constant dense<0.000000e+00> : vector<8x8xf32>
    %143 = vector.multi_reduction <add>, %142, %cst_61 [2] : vector<8x8x8xf32> to vector<8x8xf32>
    %144 = vector.shape_cast %143 : vector<8x8xf32> to vector<8x8x1xf32>
    %145 = vector.broadcast %144 : vector<8x8x1xf32> to vector<8x8x8xf32>
    %146 = arith.divf %142, %145 : vector<8x8x8xf32>
    "tpu.trace_start"() <{level = 10 : i32, message = "gst,gtd->gsd"}> : () -> ()
    %cst_62 = arith.constant dense<0.000000e+00> : vector<8x8x8xf32>
    %147 = tpu.matmul %146, %134, %cst_62 {dimension_numbers = #tpu.dot_dimension_numbers<[2], [1], [1], [2], [0, 0, 0, 1, 1, 2], [0], [0]>} : vector<8x8x8xf32>, vector<8x8x8xf32>, vector<8x8x8xf32> -> vector<8x8x8xf32>
    "tpu.trace_stop"() : () -> ()
    %148 = vector.extract_strided_slice %147 {offsets = [0, 0, 0], sizes = [2, 8, 8], strides = [1, 1, 1]} : vector<8x8x8xf32> to vector<2x8x8xf32>
    %149 = vector.extract_strided_slice %147 {offsets = [2, 0, 0], sizes = [2, 8, 8], strides = [1, 1, 1]} : vector<8x8x8xf32> to vector<2x8x8xf32>
    %150 = vector.extract_strided_slice %147 {offsets = [4, 0, 0], sizes = [2, 8, 8], strides = [1, 1, 1]} : vector<8x8x8xf32> to vector<2x8x8xf32>
    %151 = vector.extract_strided_slice %147 {offsets = [6, 0, 0], sizes = [2, 8, 8], strides = [1, 1, 1]} : vector<8x8x8xf32> to vector<2x8x8xf32>
    %152 = tpu.concatenate %148, %149, %150, %151 in 2 : vector<2x8x8xf32>, vector<2x8x8xf32>, vector<2x8x8xf32>, vector<2x8x8xf32> -> vector<2x8x32xf32>
    %153 = vector.shape_cast %152 : vector<2x8x32xf32> to vector<16x32xf32>
    %c1_63 = arith.constant 1 : index
    %c0_64 = arith.constant 0 : index
    %c0_65 = arith.constant 0 : index
    %154 = vector.load %arg3[%c1_63, %c0_64, %c0_65] : memref<2x32x32xf32, #tpu.memory_space<vmem>>, vector<1x32x32xf32>
    %155 = vector.shape_cast %154 : vector<1x32x32xf32> to vector<32x32xf32>
    %cst_66 = arith.constant dense<0.000000e+00> : vector<16x32xf32>
    %156 = tpu.matmul %153, %155, %cst_66 {dimension_numbers = #tpu.dot_dimension_numbers<[1], [0], [0], [1], [0, 0, 1, 1], [], []>} : vector<16x32xf32>, vector<32x32xf32>, vector<16x32xf32> -> vector<16x32xf32>
    %157 = vector.broadcast %114 : vector<1x32xf32> to vector<16x32xf32>
    %158 = arith.addf %156, %157 : vector<16x32xf32>
    %159 = arith.addf %112, %158 : vector<16x32xf32>
    %cst_67 = arith.constant dense<0.000000e+00> : vector<16xf32>
    %160 = vector.multi_reduction <add>, %159, %cst_67 [1] : vector<16x32xf32> to vector<16xf32>
    %161 = vector.shape_cast %160 : vector<16xf32> to vector<16x1xf32>
    %cst_68 = arith.constant 3.200000e+01 : f32
    %162 = vector.broadcast %cst_68 : f32 to vector<16x1xf32>
    %163 = arith.divf %161, %162 : vector<16x1xf32>
    %164 = vector.broadcast %163 : vector<16x1xf32> to vector<16x32xf32>
    %165 = arith.subf %159, %164 : vector<16x32xf32>
    %166 = arith.mulf %165, %165 : vector<16x32xf32>
    %cst_69 = arith.constant dense<0.000000e+00> : vector<16xf32>
    %167 = vector.multi_reduction <add>, %166, %cst_69 [1] : vector<16x32xf32> to vector<16xf32>
    %168 = vector.shape_cast %167 : vector<16xf32> to vector<16x1xf32>
    %cst_70 = arith.constant 3.200000e+01 : f32
    %169 = vector.broadcast %cst_70 : f32 to vector<16x1xf32>
    %170 = arith.divf %168, %169 : vector<16x1xf32>
    %171 = vector.broadcast %163 : vector<16x1xf32> to vector<16x32xf32>
    %172 = arith.subf %159, %171 : vector<16x32xf32>
    %cst_71 = arith.constant 9.99999974E-6 : f32
    %173 = vector.broadcast %cst_71 : f32 to vector<16x1xf32>
    %174 = arith.addf %170, %173 : vector<16x1xf32>
    %175 = math.rsqrt %174 : vector<16x1xf32>
    %176 = vector.broadcast %175 : vector<16x1xf32> to vector<16x32xf32>
    %177 = arith.mulf %172, %176 : vector<16x32xf32>
    %178 = vector.broadcast %115 : vector<1x32xf32> to vector<16x32xf32>
    %179 = arith.mulf %177, %178 : vector<16x32xf32>
    %180 = vector.broadcast %116 : vector<1x32xf32> to vector<16x32xf32>
    %181 = arith.addf %179, %180 : vector<16x32xf32>
    %c1_72 = arith.constant 1 : index
    %c0_73 = arith.constant 0 : index
    %c0_74 = arith.constant 0 : index
    %182 = vector.load %arg4[%c1_72, %c0_73, %c0_74] : memref<2x32x64xf32, #tpu.memory_space<vmem>>, vector<1x32x64xf32>
    %183 = vector.shape_cast %182 : vector<1x32x64xf32> to vector<32x64xf32>
    %cst_75 = arith.constant dense<0.000000e+00> : vector<16x64xf32>
    %184 = tpu.matmul %181, %183, %cst_75 {dimension_numbers = #tpu.dot_dimension_numbers<[1], [0], [0], [1], [0, 0, 1, 1], [], []>} : vector<16x32xf32>, vector<32x64xf32>, vector<16x64xf32> -> vector<16x64xf32>
    %185 = vector.broadcast %117 : vector<1x64xf32> to vector<16x64xf32>
    %186 = arith.addf %184, %185 : vector<16x64xf32>
    %cst_76 = arith.constant 0.000000e+00 : f32
    %187 = vector.broadcast %cst_76 : f32 to vector<16x64xf32>
    %188 = arith.maximumf %186, %187 : vector<16x64xf32>
    %c1_77 = arith.constant 1 : index
    %c0_78 = arith.constant 0 : index
    %c0_79 = arith.constant 0 : index
    %189 = vector.load %arg5[%c1_77, %c0_78, %c0_79] : memref<2x64x32xf32, #tpu.memory_space<vmem>>, vector<1x64x32xf32>
    %190 = vector.shape_cast %189 : vector<1x64x32xf32> to vector<64x32xf32>
    %cst_80 = arith.constant dense<0.000000e+00> : vector<16x32xf32>
    %191 = tpu.matmul %188, %190, %cst_80 {dimension_numbers = #tpu.dot_dimension_numbers<[1], [0], [0], [1], [0, 0, 1, 1], [], []>} : vector<16x64xf32>, vector<64x32xf32>, vector<16x32xf32> -> vector<16x32xf32>
    %192 = vector.broadcast %118 : vector<1x32xf32> to vector<16x32xf32>
    %193 = arith.addf %191, %192 : vector<16x32xf32>
    %194 = arith.addf %181, %193 : vector<16x32xf32>
    %cst_81 = arith.constant dense<0.000000e+00> : vector<16xf32>
    %195 = vector.multi_reduction <add>, %194, %cst_81 [1] : vector<16x32xf32> to vector<16xf32>
    %196 = vector.shape_cast %195 : vector<16xf32> to vector<16x1xf32>
    %cst_82 = arith.constant 3.200000e+01 : f32
    %197 = vector.broadcast %cst_82 : f32 to vector<16x1xf32>
    %198 = arith.divf %196, %197 : vector<16x1xf32>
    %199 = vector.broadcast %198 : vector<16x1xf32> to vector<16x32xf32>
    %200 = arith.subf %194, %199 : vector<16x32xf32>
    %201 = arith.mulf %200, %200 : vector<16x32xf32>
    %cst_83 = arith.constant dense<0.000000e+00> : vector<16xf32>
    %202 = vector.multi_reduction <add>, %201, %cst_83 [1] : vector<16x32xf32> to vector<16xf32>
    %203 = vector.shape_cast %202 : vector<16xf32> to vector<16x1xf32>
    %cst_84 = arith.constant 3.200000e+01 : f32
    %204 = vector.broadcast %cst_84 : f32 to vector<16x1xf32>
    %205 = arith.divf %203, %204 : vector<16x1xf32>
    %206 = vector.broadcast %198 : vector<16x1xf32> to vector<16x32xf32>
    %207 = arith.subf %194, %206 : vector<16x32xf32>
    %cst_85 = arith.constant 9.99999974E-6 : f32
    %208 = vector.broadcast %cst_85 : f32 to vector<16x1xf32>
    %209 = arith.addf %205, %208 : vector<16x1xf32>
    %210 = math.rsqrt %209 : vector<16x1xf32>
    %211 = vector.broadcast %210 : vector<16x1xf32> to vector<16x32xf32>
    %212 = arith.mulf %207, %211 : vector<16x32xf32>
    %213 = vector.broadcast %119 : vector<1x32xf32> to vector<16x32xf32>
    %214 = arith.mulf %212, %213 : vector<16x32xf32>
    %215 = vector.broadcast %120 : vector<1x32xf32> to vector<16x32xf32>
    %216 = arith.addf %214, %215 : vector<16x32xf32>
    %c16 = arith.constant 16 : index
    %c0_86 = arith.constant 0 : index
    %217 = vector.load %arg6[%c16, %c0_86] : memref<17x128xf32, #tpu.memory_space<vmem>>, vector<1x32xf32>
    %c16_87 = arith.constant 16 : index
    %c32 = arith.constant 32 : index
    %218 = vector.load %arg6[%c16_87, %c32] : memref<17x128xf32, #tpu.memory_space<vmem>>, vector<1x1xf32>
    %cst_88 = arith.constant dense<0.000000e+00> : vector<32xf32>
    %219 = vector.multi_reduction <add>, %216, %cst_88 [0] : vector<16x32xf32> to vector<32xf32>
    %220 = vector.shape_cast %219 : vector<32xf32> to vector<1x32xf32>
    %cst_89 = arith.constant 1.600000e+01 : f32
    %221 = vector.broadcast %cst_89 : f32 to vector<1x32xf32>
    %222 = arith.divf %220, %221 : vector<1x32xf32>
    %223 = arith.mulf %222, %217 : vector<1x32xf32>
    %cst_90 = arith.constant dense<0.000000e+00> : vector<1xf32>
    %224 = vector.multi_reduction <add>, %223, %cst_90 [1] : vector<1x32xf32> to vector<1xf32>
    %225 = vector.shape_cast %224 : vector<1xf32> to vector<1x1xf32>
    %226 = arith.addf %225, %218 : vector<1x1xf32>
    %c0_91 = arith.constant 0 : index
    %c0_92 = arith.constant 0 : index
    %227 = vector.load %arg7[%c0_91, %c0_92] : memref<1x1xf32, #tpu.memory_space<vmem>>, vector<1x1xf32>
    tpu.vector_store %arg7[%c0_91, %c0_92], %226 {strides = array<i32>} : memref<1x1xf32, #tpu.memory_space<vmem>>, vector<1x1xf32>,
    return
  }
}

</mosaic_0001>

<bundles_post_ra>
// kernel: tpu_custom_call.1
= control target key start
LH: loop header
LB: loop body
LE: loop exit
PB: predicated region body
PF: predicated region fallthrough
CT: control target
= control target key end

     0   :  { %v4517_v2 = vmov 0   ;;  %s5196_s0 = inlined_call_operand.vmem [shape: s32[16,1], index: 0, kind: input, shape index: {}]   ;;  %s5197_s1 = inlined_call_operand.vmem [shape: f32[50,32], index: 1, kind: input, shape index: {}]   ;;  %s5198_s2 = inlined_call_operand.vmem [shape: f32[2,32,96], index: 2, kind: input, shape index: {}]   ;;  %s5199_s3 = inlined_call_operand.vmem [shape: f32[2,32,32], index: 3, kind: input, shape index: {}]   ;;  %s5200_s4 = inlined_call_operand.vmem [shape: f32[2,32,64], index: 4, kind: input, shape index: {}]   ;;  %s5201_s5 = inlined_call_operand.vmem [shape: f32[2,64,32], index: 5, kind: input, shape index: {}]   ;;  %s5202_s6 = inlined_call_operand.vmem [shape: f32[17,128], index: 6, kind: input, shape index: {}]   ;;  %s5203_s7 = inlined_call_operand.hbm [shape: f32[1,1], index: 7, kind: output, shape index: {}]  }
   0x1   :  { %v27_v0 = vld [vmem:[%s5196_s0] sm:$0xff]  ;;  %4412 = vset.pattern.permute.xlu0 %v4517_v2  ;;  %v42_v3 = vld [vmem:[%s5197_s1 + $0x8] sm:$0xff]  ;;  %v43_v4 = vld [vmem:[%s5197_s1 + $0x10] sm:$0xff] }
   0x2   :  { %v41_v1 = vld [vmem:[%s5197_s1] sm:$0xff]  ;;  %v44_v5 = vld [vmem:[%s5197_s1 + $0x18] sm:$0xff]  ;;  %32 = vperm.xlu0 %4412, %v27_v0  }
   0x3   :  { %v4307_v6 = vpack.c.bf16 %v42_v3, %v41_v1  ;;  %v4311_v7 = vpack.c.bf16 %v44_v5, %v43_v4 }
   0x4   :  { %12 = vsyncpa [#allocation3], 0  ;;  %v28_v8 = vld [vmem:[%s5196_s0 + $0x8] sm:$0xff]  ;;  %v45_v9 = vld [vmem:[%s5197_s1 + $0x20] sm:$0xff]  ;;  %vm55_vm0 = vcmask 1041408   ;;  %v4518_v19 = vmov 0.0   ;;  %v29_v20 = vlaneseq }
   0x5   :  { %v46_v10 = vld [vmem:[%s5197_s1 + $0x28] sm:$0xff]  ;;  %4308 = vmatprep.subr.bf16.mxu0 %v4307_v6  ;;  %v142_v12 = vld [vmem:[%s5198_s2] sm:$0xff]  ;;  %v144_v14 = vld [vmem:[%s5198_s2 + $0x10] sm:$0xff]  ;;  %vm48_vm1 = vcmask 408576   ;;  %vm150_vm4 = vcmask 261120   ;;  %vm4519_vm5 = vmmov 0  }
   0x6   :  { %4310 = vmatpush3.bf16.msra.mxu0 %v4307_v6  ;;  %35 = vperm.xlu0 %4412, %v28_v8   ;;  %v4315_v11 = vpack.c.bf16 %v46_v10, %v45_v9  ;;  %v143_v13 = vld [vmem:[%s5198_s2 + $0x8] sm:$0xff]  ;;  %v145_v16 = vld [vmem:[%s5198_s2 + $0x18] sm:$0xff]  ;;  %v47_v18 = vld [vmem:[%s5197_s1 + $0x30] sm:$0x3]  ;;  %v30_v21 = vand.u32 127, %v29_v20  ;;  %s4520_s27 = smov 80  }
   0x7   :  { %4312 = vmatprep.subr.bf16.mxu0 %v4311_v7  ;;  %v4319_v15 = vpack.c.bf16 %v143_v13, %v142_v12  ;;  %v4323_v17 = vpack.c.bf16 %v145_v16, %v144_v14  ;;  %v3797_v28 = vld [vmem:[%s5202_s6] ss:$0 sm:$0xff]  ;;  %s4521_s28 = smov 104   ;;  %s4522_s29 = smov 56   ;;  %vm248_vm6 = vcmask 64512   ;;  %vm1585_vm7 = vcmask 130048  }
   0x8   :  { %s4523_s30 = smov 120   ;;  %s4524_s8 = smov 112   ;;  %vm1588_vm8 = vcmask 195584   ;;  %vm1824_vm9 = vcmask 523264   ;;  %vm3769_vm10 = vcmask 253952   ;;  %vm3778_vm11 = vcmask 0  }
   0x9   :  { %4320 = vmatprep.subr.bf16.mxu1 %v4319_v15  ;;  %s4525_s17 = smov 8   ;;  %s4526_s18 = smov 16  }
   0xa   :  { %4314 = vmatpush3.bf16.msra.mxu0 %v4311_v7  ;;  %4322 = vmatpush3.bf16.msra.mxu1 %v4319_v15  ;;  %s4527_s19 = smov 24   ;;  %s4528_s25 = smov 96  }
   0xb   :  { %4316 = vmatprep.subr.bf16.mxu0 %v4315_v11  ;;  %4324 = vmatprep.subr.bf16.mxu1 %v4323_v17  ;;  %s4529_s1 = smov [#allocation2]  }
   0xc   :  { %s3786_s26 = sshll.u32 %s4529_s1, 4  ;;  %s3787_s26 = int_to_ptr.vmem [resolvable:$true] %s3786_s26 }
   0xd   :  { %s4493_s9 = scalar_lea.vmem %s3787_s26, 16  ;;  %p4498_p1 = scmp.lt.s32.totalorder %s3787_s26, %s3787_s26 }
   0xe   :  { %4318 = vmatpush3.bf16.msra.mxu0 %v4315_v11  ;;  %4326 = vmatpush3.bf16.msra.mxu1 %v4323_v17  ;;  %p4494_p0 = scmp.ne.s32.totalorder %s3787_s26, %s4493_s9 }
   0xf   :  { %4038 = vmatprep.subr.msk.mxu0 %vm55_vm0, %v47_v18  ;;  %4054 = vmatprep.subr.mxu1 %v4518_v19 }
  0x12   :  { %4039 = vmatpush3.msk.msra.mxu0 %vm55_vm0, %v47_v18 }
  0x13   :  { %4064 = vmatprep.subr.mxu0 %v4518_v19 }
  0x81   :  { %v33_v22 = vpop.permute.xlu0 %32 }
  0x82   :  { %vm37_vm2 = vcmp.eq.s32.totalorder %v33_v22, %v30_v21 }
  0x83   :  { %v39_v23 = vsel %vm37_vm2, 1.0, %v4518_v19 }
  0x84   :  { %4040 = vmatprep.mubr.msk.f32.mxu0 %vm48_vm1, %v39_v23 }
  0x85   :  { %v36_v24 = vpop.permute.xlu0 %35 }
  0x86   :  { %vm38_vm3 = vcmp.eq.s32.totalorder %v36_v24, %v30_v21 }
  0x87   :  { %v40_v25 = vsel %vm38_vm3, 1.0, %v4518_v19 }
  0x88   :  { %4041 = vmatmul.mubr.msk.f32.vlgmr.msra.gmra.mrb[0].mxu0 %vm48_vm1, %v40_v25 }
  0x89   :  { %4066 = vmatprep.mubr.msk.f32.mxu0 %vm4519_vm5, %v4518_v19 }
 0x15b   :  { %v4613_v26 = vpop.f32.mrb[0].mxu0 }
 0x15c   :  { %v4615_v27 = vpop.f32.mrb[1].mxu0 }
 0x15d   :  { %4051 = vmatprep.mubr.msk.f32.mxu1 %vm150_vm4, %v4615_v27 }
 0x15e   :  { %4052 = vmatmul.mubr.msk.f32.vlgmr.msra.gmra.mrb[0].mxu1 %vm150_vm4, %v4613_v26 }
 0x15f   :  { %4056 = vmatprep.mubr.msk.f32.mxu1 %vm4519_vm5, %v4518_v19 }
 0x231   :  { %v4053_v29 = vpop.f32.mrb[0].mxu1 }
 0x232   :  { %v223_v30 = vpop.f32.mrb[1].mxu1  ;;  %v4634_v32 = vadd.f32 %v4053_v29, %v3797_v28 }
 0x233   :  { %v4628_v31 = vadd.f32 %v3797_v28, %v223_v30 }
 0x235   :  { %238 = vrot.lane.b32.xlu0 %v4628_v31, %s4520_s27  ;;  %234 = vrot.lane.b32.xlu1 %v4628_v31, %s4521_s28 }
 0x239   :  { %242 = vrot.lane.b32.xlu0 %v4628_v31, %s4522_s29  ;;  %236 = vrot.lane.b32.xlu1 %v4634_v32, %s4521_s28 }
 0x23d   :  { %246 = vrot.lane.b32.xlu0 %v4628_v31, %s4523_s30  ;;  %240 = vrot.lane.b32.xlu1 %v4634_v32, %s4520_s27 }
 0x241   :  { %244 = vrot.lane.b32.xlu1 %v4634_v32, %s4522_s29 }
 0x245   :  { %323 = vrot.lane.b32.xlu1 %v4634_v32, %s4523_s30 }
 0x2a7   :  { %v4648_v33 = vpop.permute.xlu0 %238  ;;  %v4650_v34 = vpop.permute.xlu1 %234 }
 0x2a8   :  { %399 = vrot.lane.b32.xlu0 %v4650_v34, %s4523_s30 }
 0x2ab   :  { %v4654_v35 = vpop.permute.xlu0 %242  ;;  %v4656_v36 = vpop.permute.xlu1 %236 }
 0x2ac   :  { %551 = vrot.lane.b32.xlu0 %v4648_v33, %s4523_s30  ;;  %475 = vrot.lane.b32.xlu1 %v4656_v36, %s4523_s30 }
 0x2af   :  { %v247_v37 = vpop.permute.xlu0 %246  ;;  %v4662_v38 = vpop.permute.xlu1 %240 }
 0x2b0   :  { %4055 = vmatpush3.xpose.msk.msra.mxu1 %vm248_vm6, %v247_v37  ;;  %703 = vrot.lane.b32.xlu0 %v4654_v35, %s4523_s30 }
 0x2b1   :  { %627 = vrot.lane.b32.xlu1 %v4662_v38, %s4523_s30  ;;  %4059 = vmatprep.subr.mxu1 %v4518_v19 }
 0x2b3   :  { %4057 = vmatmul.mubr.msk.f32.vlgmr.msra.gmra.mrb[2].mxu1 %vm248_vm6, %v4628_v31  ;;  %v4672_v39 = vpop.permute.xlu1 %244 }
 0x2b4   :  { %4061 = vmatprep.mubr.msk.f32.mxu1 %vm4519_vm5, %v4518_v19 }
 0x2b5   :  { %779 = vrot.lane.b32.xlu1 %v4672_v39, %s4523_s30 }
 0x2b7   :  { %v324_v40 = vpop.permute.xlu1 %323 }
 0x2b8   :  { %4060 = vmatpush3.xpose.msk.msra.mxu1 %vm248_vm6, %v324_v40 }
 0x2b9   :  { %4069 = vmatprep.subr.mxu1 %v4518_v19 }
 0x2bb   :  { %4062 = vmatmul.mubr.msk.f32.vlgmr.msra.gmra.mrb[4].mxu1 %vm248_vm6, %v4634_v32 }
 0x2bc   :  { %4071 = vmatprep.mubr.msk.f32.mxu1 %vm4519_vm5, %v4518_v19 }
 0x31a   :  { %v400_v41 = vpop.permute.xlu0 %399 }
 0x31b   :  { %4065 = vmatpush3.xpose.msk.msra.mxu0 %vm248_vm6, %v400_v41 }
 0x31c   :  { %4074 = vmatprep.subr.mxu0 %v4518_v19 }
 0x31e   :  { %4067 = vmatmul.mubr.msk.f32.vlgmr.msra.gmra.mrb[2].mxu0 %vm248_vm6, %v4650_v34  ;;  %v552_v42 = vpop.permute.xlu0 %551  ;;  %v476_v43 = vpop.permute.xlu1 %475 }
 0x31f   :  { %4070 = vmatpush3.xpose.msk.msra.mxu1 %vm248_vm6, %v476_v43  ;;  %4075 = vmatpush3.xpose.msk.msra.mxu0 %vm248_vm6, %v552_v42 }
 0x320   :  { %4076 = vmatprep.mubr.msk.f32.mxu0 %vm4519_vm5, %v4518_v19  ;;  %4084 = vmatprep.subr.mxu0 %v4518_v19 }
 0x321   :  { %4079 = vmatprep.subr.mxu1 %v4518_v19 }
 0x322   :  { %4077 = vmatmul.mubr.msk.f32.vlgmr.msra.gmra.mrb[4].mxu0 %vm248_vm6, %v4648_v33  ;;  %v704_v44 = vpop.permute.xlu0 %703  ;;  %4072 = vmatmul.mubr.msk.f32.vlgmr.msra.gmra.mrb[6].mxu1 %vm248_vm6, %v4656_v36 }
 0x323   :  { %v628_v45 = vpop.permute.xlu1 %627  ;;  %4085 = vmatpush3.xpose.msk.msra.mxu0 %vm248_vm6, %v704_v44  ;;  %4081 = vmatprep.mubr.msk.f32.mxu1 %vm4519_vm5, %v4518_v19 }
 0x324   :  { %4080 = vmatpush3.xpose.msk.msra.mxu1 %vm248_vm6, %v628_v45  ;;  %4086 = vmatprep.mubr.msk.f32.mxu0 %vm4519_vm5, %v4518_v19 }
 0x325   :  { %4089 = vmatprep.subr.mxu1 %v4518_v19  ;;  %4094 = vmatprep.subr.mxu0 %v4518_v19 }
 0x326   :  { %4087 = vmatmul.mubr.msk.f32.vlgmr.msra.gmra.mrb[6].mxu0 %vm248_vm6, %v4654_v35 }
 0x327   :  { %4082 = vmatmul.mubr.msk.f32.vlgmr.msra.gmra.mrb[8].mxu1 %vm248_vm6, %v4662_v38  ;;  %v780_v46 = vpop.permute.xlu1 %779  ;;  %4096 = vmatprep.mubr.msk.f32.mxu0 %vm4519_vm5, %v4518_v19 }
 0x328   :  { %4090 = vmatpush3.xpose.msk.msra.mxu1 %vm248_vm6, %v780_v46  ;;  %4091 = vmatprep.mubr.msk.f32.mxu1 %vm4519_vm5, %v4518_v19 }
 0x329   :  { %4099 = vmatprep.subr.mxu1 %v4518_v19 }
 0x32b   :  { %4092 = vmatmul.mubr.msk.f32.vlgmr.msra.gmra.mrb[10].mxu1 %vm248_vm6, %v4672_v39 }
 0x32c   :  { %4101 = vmatprep.mubr.msk.f32.mxu1 %vm4519_vm5, %v4518_v19 }
 0x386   :  { %v319_v47 = vpop.f32.mrb[2].mxu1 }
 0x387   :  { %v855_v48 = vmul.f32 0.35355338, %v319_v47  ;;  %v4058_v49 = vpop.f32.mrb[3].mxu1 }
 0x389   :  { %v863_v50 = vsel %vm248_vm6, %v855_v48, -inf }
 0x38a   :  { %864 = vmax.xlane.f32.xlu0 %v863_v50 }
 0x38e   :  { %v395_v51 = vpop.f32.mrb[4].mxu1 }
 0x38f   :  { %v856_v52 = vmul.f32 0.35355338, %v395_v51  ;;  %v4063_v53 = vpop.f32.mrb[5].mxu1 }
 0x391   :  { %v866_v54 = vsel %vm248_vm6, %v856_v52, -inf }
 0x392   :  { %867 = vmax.xlane.f32.xlu1 %v866_v54 }
 0x3f1   :  { %v471_v55 = vpop.f32.mrb[2].mxu0 }
 0x3f2   :  { %v857_v56 = vmul.f32 0.35355338, %v471_v55  ;;  %v4068_v57 = vpop.f32.mrb[3].mxu0 }
 0x3f4   :  { %v869_v58 = vsel %vm248_vm6, %v857_v56, -inf }
 0x3f5   :  { %870 = vmax.xlane.f32.xlu0 %v869_v58  ;;  %v547_v59 = vpop.f32.mrb[6].mxu1  ;;  %v623_v60 = vpop.f32.mrb[4].mxu0 }
 0x3f6   :  { %v858_v61 = vmul.f32 0.35355338, %v547_v59  ;;  %v859_v62 = vmul.f32 0.35355338, %v623_v60  ;;  %v4073_v63 = vpop.f32.mrb[7].mxu1  ;;  %v4078_v0 = vpop.f32.mrb[5].mxu0 }
 0x3f8   :  { %v875_v1 = vsel %vm248_vm6, %v859_v62, -inf  ;;  %v872_v2 = vsel %vm248_vm6, %v858_v61, -inf }
 0x3f9   :  { %v775_v3 = vpop.f32.mrb[6].mxu0  ;;  %876 = vmax.xlane.f32.xlu1 %v875_v1  ;;  %873 = vmax.xlane.f32.xlu0 %v872_v2 }
 0x3fa   :  { %v861_v4 = vmul.f32 0.35355338, %v775_v3  ;;  %v699_v5 = vpop.f32.mrb[8].mxu1  ;;  %v4088_v6 = vpop.f32.mrb[7].mxu0 }
 0x3fb   :  { %v860_v7 = vmul.f32 0.35355338, %v699_v5  ;;  %v4083_v8 = vpop.f32.mrb[9].mxu1 }
 0x3fc   :  { %v881_v9 = vsel %vm248_vm6, %v861_v4, -inf }
 0x3fd   :  { %882 = vmax.xlane.f32.xlu1 %v881_v9  ;;  %v878_v10 = vsel %vm248_vm6, %v860_v7, -inf }
 0x3fe   :  { %879 = vmax.xlane.f32.xlu0 %v878_v10  ;;  %v851_v11 = vpop.f32.mrb[10].mxu1 }
 0x3ff   :  { %v862_v12 = vmul.f32 0.35355338, %v851_v11  ;;  %v4093_v13 = vpop.f32.mrb[11].mxu1 }
 0x401   :  { %v884_v14 = vsel %vm248_vm6, %v862_v12, -inf }
 0x402   :  { %885 = vmax.xlane.f32.xlu0 %v884_v14 }
 0x40e   :  { %951 = vrot.lane.b32.xlu1 %v4628_v31, %s4524_s8 }
 0x412   :  { %1103 = vrot.lane.b32.xlu1 %v4650_v34, %s4524_s8 }
 0x416   :  { %1179 = vrot.lane.b32.xlu1 %v4656_v36, %s4524_s8 }
 0x417   :  { %v865_v16 = vpop.xlane.xlu0 %864 }
 0x418   :  { %1027 = vrot.lane.b32.xlu0 %v4634_v32, %s4524_s8  ;;  %v887_v18 = vsub.f32 %v855_v48, %v865_v16 }
 0x41a   :  { %1331 = vrot.lane.b32.xlu1 %v4662_v38, %s4524_s8  ;;  %v895_v21 = vmul.f32 1.442695, %v887_v18 }
 0x41c   :  { %1255 = vrot.lane.b32.xlu0 %v4648_v33, %s4524_s8 }
 0x41f   :  { %v868_v15 = vpop.xlane.xlu1 %867 }
 0x420   :  { %v888_v17 = vsub.f32 %v856_v52, %v868_v15 }
 0x422   :  { %v897_v20 = vmul.f32 1.442695, %v888_v17 }
 0x424   :  { %4413 = vpow2.f32 %v897_v20 }
 0x425   :  { %4415 = vpow2.f32 %v895_v21 }
 0x42e   :  { %v4740_v22 = vpop.eup %4413 }
 0x42f   :  { %v4742_v23 = vpop.eup %4415  ;;  %v914_v24 = vsel %vm248_vm6, %v4740_v22, 0.0 }
 0x430   :  { %v911_v25 = vsel %vm248_vm6, %v4742_v23, 0.0 }
 0x43b   :  { %915 = vadd.xlane.f32.xlu0 %v914_v24 }
 0x43e   :  { %912 = vadd.xlane.f32.xlu1 %v911_v25 }
 0x482   :  { %v871_v28 = vpop.xlane.xlu0 %870 }
 0x483   :  { %v889_v29 = vsub.f32 %v857_v56, %v871_v28 }
 0x485   :  { %v899_v30 = vmul.f32 1.442695, %v889_v29 }
 0x486   :  { %v874_v31 = vpop.xlane.xlu0 %873  ;;  %v877_v32 = vpop.xlane.xlu1 %876 }
 0x487   :  { %4417 = vpow2.f32 %v899_v30  ;;  %v890_v33 = vsub.f32 %v858_v61, %v874_v31  ;;  %v891_v34 = vsub.f32 %v859_v62, %v877_v32 }
 0x489   :  { %v901_v36 = vmul.f32 1.442695, %v890_v33  ;;  %v903_v37 = vmul.f32 1.442695, %v891_v34  ;;  %v1591_v33 = vld [vmem:[%s5199_s3] sm:$0xff]  ;;  %v1592_v34 = vld [vmem:[%s5199_s3 + $0x8] sm:$0xff] }
 0x48a   :  { %v883_v38 = vpop.xlane.xlu1 %882 }
 0x48b   :  { %4419 = vpow2.f32 %v901_v36  ;;  %v880_v40 = vpop.xlane.xlu0 %879  ;;  %v893_v41 = vsub.f32 %v861_v4, %v883_v38  ;;  %v4327_v36 = vpack.c.bf16 %v1592_v34, %v1591_v33  ;;  %v1594_v38 = vld [vmem:[%s5199_s3 + $0x18] sm:$0xff] }
 0x48c   :  { %4421 = vpow2.f32 %v903_v37  ;;  %v892_v42 = vsub.f32 %v860_v7, %v880_v40  ;;  %v1593_v37 = vld [vmem:[%s5199_s3 + $0x10] sm:$0xff] }
 0x48d   :  { %v907_v43 = vmul.f32 1.442695, %v893_v41  ;;  %v4331_v40 = vpack.c.bf16 %v1594_v38, %v1593_v37 }
 0x48e   :  { %v905_v44 = vmul.f32 1.442695, %v892_v42  ;;  %v952_v45 = vpop.permute.xlu1 %951 }
 0x48f   :  { %4423 = vpow2.f32 %v907_v43  ;;  %v886_v46 = vpop.xlane.xlu0 %885  ;;  %4095 = vmatpush3.msra.mxu0 %v952_v45 }
 0x490   :  { %4425 = vpow2.f32 %v905_v44  ;;  %v894_v47 = vsub.f32 %v862_v12, %v886_v46  ;;  %4104 = vmatprep.subr.mxu0 %v4518_v19 }
 0x491   :  { %v4418_v48 = vpop.eup %4417 }
 0x492   :  { %v909_v49 = vmul.f32 1.442695, %v894_v47  ;;  %v917_v50 = vsel %vm248_vm6, %v4418_v48, 0.0  ;;  %v1104_v62 = vpop.permute.xlu1 %1103 }
 0x493   :  { %v1028_v51 = vpop.permute.xlu0 %1027  ;;  %918 = vadd.xlane.f32.xlu1 %v917_v50 }
 0x494   :  { %4427 = vpow2.f32 %v909_v49  ;;  %4100 = vmatpush3.msra.mxu1 %v1028_v51 }
 0x495   :  { %v4420_v52 = vpop.eup %4419  ;;  %4109 = vmatprep.subr.mxu1 %v4518_v19 }
 0x496   :  { %v4422_v53 = vpop.eup %4421  ;;  %v920_v54 = vsel %vm248_vm6, %v4420_v52, 0.0  ;;  %v1180_v63 = vpop.permute.xlu1 %1179 }
 0x497   :  { %921 = vadd.xlane.f32.xlu0 %v920_v54  ;;  %v923_v55 = vsel %vm248_vm6, %v4422_v53, 0.0  ;;  %v1256_v0 = vpop.permute.xlu0 %1255 }
 0x498   :  { %924 = vadd.xlane.f32.xlu1 %v923_v55 }
 0x499   :  { %v4753_v56 = vpop.eup %4423 }
 0x49a   :  { %v4426_v57 = vpop.eup %4425  ;;  %v929_v58 = vsel %vm248_vm6, %v4753_v56, 0.0  ;;  %v1332_v1 = vpop.permute.xlu1 %1331 }
 0x49b   :  { %v926_v59 = vsel %vm248_vm6, %v4426_v57, 0.0 }
 0x49c   :  { %927 = vadd.xlane.f32.xlu0 %v926_v59  ;;  %930 = vadd.xlane.f32.xlu1 %v929_v58 }
 0x49e   :  { %v4758_v60 = vpop.eup %4427 }
 0x49f   :  { %v932_v61 = vsel %vm248_vm6, %v4758_v60, 0.0 }
 0x4a0   :  { %933 = vadd.xlane.f32.xlu0 %v932_v61 }
 0x4ad   :  { %1483 = vrot.lane.b32.xlu1 %v4672_v39, %s4524_s8 }
 0x4b6   :  { %1407 = vrot.lane.b32.xlu0 %v4654_v35, %s4524_s8 }
 0x4c8   :  { %v916_v2 = vpop.xlane.xlu0 %915 }
 0x4c9   :  { %4429 = vrcp.f32 %v916_v2 }
 0x4cb   :  { %v913_v3 = vpop.xlane.xlu1 %912 }
 0x4cc   :  { %4431 = vrcp.f32 %v913_v3 }
 0x4d3   :  { %v4430_v4 = vpop.eup %4429 }
 0x4d4   :  { %v938_v5 = vmul.f32 %v4430_v4, %v4740_v22 }
 0x4d6   :  { %v4432_v6 = vpop.eup %4431  ;;  %4102 = vmatmul.mubr.msk.f32.vlgmr.msra.gmra.mrb[12].mxu1 %vm248_vm6, %v938_v5 }
 0x4d7   :  { %v936_v7 = vmul.f32 %v4432_v6, %v4742_v23  ;;  %4110 = vmatpush3.msra.mxu1 %v1180_v63  ;;  %4111 = vmatprep.mubr.msk.f32.mxu1 %vm4519_vm5, %v4518_v19 }
 0x4d8   :  { %4119 = vmatprep.subr.mxu1 %v4518_v19 }
 0x4d9   :  { %4097 = vmatmul.mubr.msk.f32.vlgmr.msra.gmra.mrb[8].mxu0 %vm248_vm6, %v936_v7 }
 0x4da   :  { %4105 = vmatpush3.msra.mxu0 %v1104_v62  ;;  %4106 = vmatprep.mubr.msk.f32.mxu0 %vm4519_vm5, %v4518_v19 }
 0x4db   :  { %4114 = vmatprep.subr.mxu0 %v4518_v19 }
 0x520   :  { %v919_v35 = vpop.xlane.xlu1 %918 }
 0x521   :  { %4433 = vrcp.f32 %v919_v35 }
 0x524   :  { %v922_v39 = vpop.xlane.xlu0 %921 }
 0x525   :  { %4435 = vrcp.f32 %v922_v39  ;;  %v925_v8 = vpop.xlane.xlu1 %924 }
 0x526   :  { %4437 = vrcp.f32 %v925_v8 }
 0x529   :  { %v928_v9 = vpop.xlane.xlu0 %927  ;;  %v931_v10 = vpop.xlane.xlu1 %930 }
 0x52a   :  { %4439 = vrcp.f32 %v928_v9 }
 0x52b   :  { %v4434_v11 = vpop.eup %4433  ;;  %4441 = vrcp.f32 %v931_v10 }
 0x52c   :  { %v940_v12 = vmul.f32 %v4434_v11, %v4418_v48 }
 0x52d   :  { %v934_v13 = vpop.xlane.xlu0 %933  ;;  %v1484_v24 = vpop.permute.xlu1 %1483 }
 0x52e   :  { %4443 = vrcp.f32 %v934_v13  ;;  %4107 = vmatmul.mubr.msk.f32.vlgmr.msra.gmra.mrb[10].mxu0 %vm248_vm6, %v940_v12 }
 0x52f   :  { %v4436_v14 = vpop.eup %4435  ;;  %4115 = vmatpush3.msra.mxu0 %v1256_v0  ;;  %4116 = vmatprep.mubr.msk.f32.mxu0 %vm4519_vm5, %v4518_v19 }
 0x530   :  { %v4438_v15 = vpop.eup %4437  ;;  %v942_v16 = vmul.f32 %v4436_v14, %v4420_v52  ;;  %4124 = vmatprep.subr.mxu0 %v4518_v19 }
 0x531   :  { %v944_v17 = vmul.f32 %v4438_v15, %v4422_v53  ;;  %v1408_v18 = vpop.permute.xlu0 %1407 }
 0x532   :  { %4112 = vmatmul.mubr.msk.f32.vlgmr.msra.gmra.mrb[14].mxu1 %vm248_vm6, %v942_v16 }
 0x533   :  { %4117 = vmatmul.mubr.msk.f32.vlgmr.msra.gmra.mrb[12].mxu0 %vm248_vm6, %v944_v17  ;;  %4120 = vmatpush3.msra.mxu1 %v1332_v1  ;;  %v3824_v1 = vld [vmem:[%s5202_s6 + $0x1] ss:$0 sm:$0xff]  ;;  %v1722_v17 = vld [vmem:[%s5200_s4 + $0x8] sm:$0xff] }
 0x534   :  { %v4440_v20 = vpop.eup %4439  ;;  %4125 = vmatpush3.msra.mxu0 %v1408_v18  ;;  %4121 = vmatprep.mubr.msk.f32.mxu1 %vm4519_vm5, %v4518_v19 }
 0x535   :  { %v4442_v21 = vpop.eup %4441  ;;  %v946_v22 = vmul.f32 %v4440_v20, %v4426_v57  ;;  %4126 = vmatprep.mubr.msk.f32.mxu0 %vm4519_vm5, %v4518_v19  ;;  %4129 = vmatprep.subr.mxu1 %v4518_v19  ;;  %v1723_v20 = vld [vmem:[%s5200_s4 + $0x10] sm:$0xff] }
 0x536   :  { %v948_v23 = vmul.f32 %v4442_v21, %v4753_v56  ;;  %v1724_v21 = vld [vmem:[%s5200_s4 + $0x18] sm:$0xff] }
 0x537   :  { %4122 = vmatmul.mubr.msk.f32.vlgmr.msra.gmra.mrb[16].mxu1 %vm248_vm6, %v946_v22  ;;  %v4339_v22 = vpack.c.bf16 %v1724_v21, %v1723_v20 }
 0x538   :  { %v4444_v25 = vpop.eup %4443  ;;  %4127 = vmatmul.mubr.msk.f32.vlgmr.msra.gmra.mrb[14].mxu0 %vm248_vm6, %v948_v23  ;;  %4130 = vmatpush3.msra.mxu1 %v1484_v24  ;;  %v1812_v23 = vld [vmem:[%s5201_s5] sm:$0xff]  ;;  %v1813_v24 = vld [vmem:[%s5201_s5 + $0x8] sm:$0xff] }
 0x539   :  { %v950_v28 = vmul.f32 %v4444_v25, %v4758_v60  ;;  %4131 = vmatprep.mubr.msk.f32.mxu1 %vm4519_vm5, %v4518_v19  ;;  %4328 = vmatprep.subr.bf16.mxu1 %v4327_v36  ;;  %v1814_v25 = vld [vmem:[%s5201_s5 + $0x10] sm:$0xff] }
 0x53b   :  { %4132 = vmatmul.mubr.msk.f32.vlgmr.msra.gmra.mrb[18].mxu1 %vm248_vm6, %v950_v28  ;;  %v4343_v28 = vpack.c.bf16 %v1813_v24, %v1812_v23 }
 0x53c   :  { %4330 = vmatpush3.bf16.msra.mxu1 %v4327_v36 }
 0x53d   :  { %4332 = vmatprep.subr.bf16.mxu1 %v4331_v40  ;;  %4344 = vmatprep.subr.bf16.mxu0 %v4343_v28 }
 0x53e   :  { %4346 = vmatpush3.bf16.msra.mxu0 %v4343_v28 }
 0x540   :  { %4334 = vmatpush3.bf16.msra.mxu1 %v4331_v40 }
 0x5a9   :  { %v1099_v29 = vpop.f32.mrb[12].mxu1 }
 0x5aa   :  { %v4103_v30 = vpop.f32.mrb[13].mxu1 }
 0x5ac   :  { %v1023_v31 = vpop.f32.mrb[8].mxu0 }
 0x5ad   :  { %v4098_v32 = vpop.f32.mrb[9].mxu0 }
 0x5ae   :  { %v1817_v32 = vld [vmem:[%s5201_s5 + $0x28] sm:$0xff] }
 0x601   :  { %v1175_v41 = vpop.f32.mrb[10].mxu0 }
 0x602   :  { %1561 = vrot.lane.b32.xlu0 %v1175_v41, %s4525_s17  ;;  %v4108_v42 = vpop.f32.mrb[11].mxu0 }
 0x605   :  { %v1251_v43 = vpop.f32.mrb[14].mxu1 }
 0x606   :  { %v1327_v44 = vpop.f32.mrb[12].mxu0  ;;  %1563 = vrot.lane.b32.xlu1 %v1251_v43, %s4525_s17  ;;  %v4113_v45 = vpop.f32.mrb[15].mxu1  ;;  %v3827_v43 = vld [vmem:[%s5202_s6 + $0x2] ss:$0 sm:$0xff] }
 0x607   :  { %1569 = vrot.lane.b32.xlu0 %v1327_v44, %s4526_s18  ;;  %v4118_v46 = vpop.f32.mrb[13].mxu0  ;;  %v3828_v45 = vld [vmem:[%s5202_s6 + $0x3] ss:$0 sm:$0xff] }
 0x60a   :  { %v1403_v47 = vpop.f32.mrb[16].mxu1 }
 0x60b   :  { %v1479_v48 = vpop.f32.mrb[14].mxu0  ;;  %1571 = vrot.lane.b32.xlu1 %v1403_v47, %s4526_s18  ;;  %v4123_v49 = vpop.f32.mrb[17].mxu1 }
 0x60c   :  { %1577 = vrot.lane.b32.xlu0 %v1479_v48, %s4527_s19  ;;  %v4128_v50 = vpop.f32.mrb[15].mxu0 }
 0x60e   :  { %v1555_v51 = vpop.f32.mrb[18].mxu1 }
 0x60f   :  { %1579 = vrot.lane.b32.xlu1 %v1555_v51, %s4527_s19  ;;  %v4133_v52 = vpop.f32.mrb[19].mxu1 }
 0x610   :  { %v1818_v52 = vld [vmem:[%s5201_s5 + $0x30] sm:$0xff] }
 0x674   :  { %v1562_v53 = vpop.permute.xlu0 %1561 }
 0x675   :  { %v1583_v56 = vsel %vm248_vm6, %v1023_v31, %v1562_v53  ;;  %v1816_v31 = vld [vmem:[%s5201_s5 + $0x20] sm:$0xff]  ;;  %v1819_v53 = vld [vmem:[%s5201_s5 + $0x38] sm:$0xff] }
 0x676   :  { %v4351_v33 = vpack.c.bf16 %v1817_v32, %v1816_v31 }
 0x678   :  { %v1564_v54 = vpop.permute.xlu1 %1563 }
 0x679   :  { %v1570_v55 = vpop.permute.xlu0 %1569  ;;  %v1584_v61 = vsel %vm248_vm6, %v1099_v29, %v1564_v54  ;;  %v1815_v29 = vld [vmem:[%s5201_s5 + $0x18] sm:$0xff]  ;;  %v4355_v54 = vpack.c.bf16 %v1819_v53, %v1818_v52 }
 0x67a   :  { %v1586_v58 = vsel %vm1585_vm7, %v1583_v56, %v1570_v55  ;;  %v4347_v30 = vpack.c.bf16 %v1815_v29, %v1814_v25  ;;  %v3829_v55 = vld [vmem:[%s5202_s6 + $0x4] ss:$0 sm:$0xff]  ;;  %v3835_v29 = vld [vmem:[%s5202_s6 + $0x6] ss:$0 sm:$0xff] }
 0x67c   :  { %4348 = vmatprep.subr.bf16.mxu0 %v4347_v30 }
 0x67d   :  { %v1572_v57 = vpop.permute.xlu1 %1571  ;;  %4350 = vmatpush3.bf16.msra.mxu0 %v4347_v30 }
 0x67e   :  { %v1578_v59 = vpop.permute.xlu0 %1577  ;;  %v1587_v62 = vsel %vm1585_vm7, %v1584_v61, %v1572_v57  ;;  %4352 = vmatprep.subr.bf16.mxu0 %v4351_v33 }
 0x67f   :  { %v1589_v60 = vsel %vm1588_vm8, %v1586_v58, %v1578_v59 }
 0x680   :  { %4142 = vmatprep.mubr.msk.f32.mxu1 %vm150_vm4, %v1589_v60 }
 0x681   :  { %v1580_v63 = vpop.permute.xlu1 %1579  ;;  %4354 = vmatpush3.bf16.msra.mxu0 %v4351_v33  ;;  %v3836_v33 = vld [vmem:[%s5202_s6 + $0x7] ss:$0 sm:$0xff] }
 0x682   :  { %v1590_v0 = vsel %vm1588_vm8, %v1587_v62, %v1580_v63  ;;  %4356 = vmatprep.subr.bf16.mxu0 %v4355_v54  ;;  %v3832_v62 = vld [vmem:[%s5202_s6 + $0x5] ss:$0 sm:$0xff] }
 0x683   :  { %4143 = vmatmul.mubr.msk.f32.vlgmr.msra.gmra.mrb[20].mxu1 %vm150_vm4, %v1590_v0 }
 0x685   :  { %4358 = vmatpush3.bf16.msra.mxu0 %v4355_v54 }
 0x686   :  { %4196 = vmatprep.subr.mxu0 %v4518_v19 }
 0x756   :  { %v4144_v2 = vpop.f32.mrb[20].mxu1 }
 0x757   :  { %v1677_v3 = vadd.f32 %v4144_v2, %v3824_v1  ;;  %v1671_v4 = vpop.f32.mrb[21].mxu1 }
 0x758   :  { %v1672_v5 = vadd.f32 %v3824_v1, %v1671_v4 }
 0x759   :  { %v1681_v6 = vadd.f32 %v4613_v26, %v1677_v3 }
 0x75a   :  { %v1680_v7 = vadd.f32 %v1672_v5, %v4615_v27  ;;  %v1721_v27 = vld [vmem:[%s5200_s4] sm:$0xff] }
 0x75b   :  { %v1685_v35 = vsel %vm150_vm4, %v1681_v6, 0.0  ;;  %v4335_v18 = vpack.c.bf16 %v1722_v17, %v1721_v27  ;;  %v3839_v27 = vld [vmem:[%s5198_s2 + $0x30] sm:$0xff]  ;;  %v3840_v17 = vld [vmem:[%s5198_s2 + $0x38] sm:$0xff] }
 0x75c   :  { %1686 = vadd.xlane.f32.xlu1 %v1685_v35  ;;  %v1682_v39 = vsel %vm150_vm4, %v1680_v7, 0.0 }
 0x75d   :  { %1683 = vadd.xlane.f32.xlu0 %v1682_v39  ;;  %4336 = vmatprep.subr.bf16.mxu1 %v4335_v18 }
 0x75e   :  { %4338 = vmatpush3.bf16.msra.mxu1 %v4335_v18  ;;  %v4363_v18 = vpack.c.bf16 %v3840_v17, %v3839_v27 }
 0x75f   :  { %4340 = vmatprep.subr.bf16.mxu1 %v4339_v22 }
 0x762   :  { %4342 = vmatpush3.bf16.msra.mxu1 %v4339_v22 }
 0x7e9   :  { %v1687_v8 = vpop.xlane.xlu1 %1686 }
 0x7ea   :  { %v1690_v9 = vmul.f32 0.03125, %v1687_v8  ;;  %v1684_v10 = vpop.xlane.xlu0 %1683 }
 0x7eb   :  { %v1689_v11 = vmul.f32 0.03125, %v1684_v10 }
 0x7ec   :  { %v1692_v12 = vsub.f32 %v1681_v6, %v1690_v9 }
 0x7ed   :  { %v1691_v13 = vsub.f32 %v1680_v7, %v1689_v11 }
 0x7ee   :  { %v1694_v16 = vmul.f32 %v1692_v12, %v1692_v12 }
 0x7ef   :  { %v1693_v14 = vmul.f32 %v1691_v13, %v1691_v13 }
 0x7f0   :  { %v1698_v26 = vsel %vm150_vm4, %v1694_v16, 0.0  ;;  %v3838_v16 = vld [vmem:[%s5198_s2 + $0x28] sm:$0xff] }
 0x7f1   :  { %v1695_v15 = vsel %vm150_vm4, %v1693_v14, 0.0 }
 0x7f2   :  { %1696 = vadd.xlane.f32.xlu0 %v1695_v15  ;;  %v3837_v15 = vld [vmem:[%s5198_s2 + $0x20] sm:$0xff]  ;;  %s4497_s2 = scalar_lea.vmem %s3787_s26, 32 }
 0x7f3   :  { %p4499_p2 = scmp.lt.s32.totalorder %s4497_s2, %s4493_s9 }
 0x7f5   :  { %p4500_p3 = por %p4499_p2, %p4498_p1 }
 0x7f6   :  { %1699 = vadd.xlane.f32.xlu0 %v1698_v26  ;;  %v4359_v26 = vpack.c.bf16 %v3838_v16, %v3837_v15 }
 0x7f7   :  { %p4501_p4 = pnand %p4500_p3, %p4494_p0 }
 0x7f8   :  { %4360 = vmatprep.subr.bf16.mxu1 %v4359_v26 }
 0x87f   :  { %v1697_v34 = vpop.xlane.xlu0 %1696 }
 0x880   :  { %v1701_v36 = vmul.f32 0.03125, %v1697_v34 }
 0x882   :  { %v1703_v37 = vadd.f32 1e-05, %v1701_v36 }
 0x883   :  { %v1700_v38 = vpop.xlane.xlu0 %1699 }
 0x884   :  { %4445 = vrsqrt.f32 %v1703_v37  ;;  %v1702_v40 = vmul.f32 0.03125, %v1700_v38 }
 0x886   :  { %v1704_v41 = vadd.f32 1e-05, %v1702_v40  ;;  %v3841_v40 = vld [vmem:[%s5202_s6 + $0x8] ss:$0 sm:$0xff] }
 0x888   :  { %4447 = vrsqrt.f32 %v1704_v41 }
 0x88e   :  { %v4446_v42 = vpop.eup %4445 }
 0x88f   :  { %v1707_v44 = vmul.f32 %v4446_v42, %v1691_v13 }
 0x891   :  { %v1713_v46 = vmul.f32 %v3827_v43, %v1707_v44 }
 0x892   :  { %v4448_v47 = vpop.eup %4447 }
 0x893   :  { %v1708_v48 = vmul.f32 %v4448_v47, %v1692_v12  ;;  %v1719_v49 = vadd.f32 %v3828_v45, %v1713_v46 }
 0x895   :  { %v1714_v50 = vmul.f32 %v3827_v43, %v1708_v48  ;;  %4153 = vmatprep.mubr.msk.f32.mxu1 %vm150_vm4, %v1719_v49 }
 0x897   :  { %v1720_v51 = vadd.f32 %v3828_v45, %v1714_v50 }
 0x899   :  { %4154 = vmatmul.mubr.msk.f32.vlgmr.msra.gmra.mrb[22].mxu1 %vm150_vm4, %v1720_v51 }
 0x89a   :  { %4362 = vmatpush3.bf16.msra.mxu1 %v4359_v26 }
 0x89b   :  { %4364 = vmatprep.subr.bf16.mxu1 %v4363_v18 }
 0x89e   :  { %4366 = vmatpush3.bf16.msra.mxu1 %v4363_v18 }
 0x89f   :  { %4186 = vmatprep.subr.mxu1 %v4518_v19 }
 0x96c   :  { %v4155_v56 = vpop.f32.mrb[22].mxu1 }
 0x96d   :  { %v1807_v57 = vadd.f32 %v4155_v56, %v3829_v55  ;;  %v1801_v58 = vpop.f32.mrb[23].mxu1 }
 0x96e   :  { %v1802_v59 = vadd.f32 %v3829_v55, %v1801_v58 }
 0x96f   :  { %v1811_v61 = vmax.f32 %v1807_v57, 0.0 }
 0x970   :  { %v1810_v60 = vmax.f32 %v1802_v59, 0.0 }
 0x972   :  { %4172 = vmatprep.mubr.msk.f32.mxu0 %vm1824_vm9, %v1810_v60 }
 0x973   :  { %4173 = vmatmul.mubr.msk.f32.vlgmr.msra.gmra.mrb[16].mxu0 %vm1824_vm9, %v1811_v61 }
 0x974   :  { %4198 = vmatprep.mubr.msk.f32.mxu0 %vm4519_vm5, %v4518_v19 }
 0xa46   :  { %v4174_v63 = vpop.f32.mrb[16].mxu0 }
 0xa47   :  { %v1903_v0 = vadd.f32 %v4174_v63, %v3832_v62  ;;  %v1897_v1 = vpop.f32.mrb[17].mxu0 }
 0xa48   :  { %v1898_v2 = vadd.f32 %v3832_v62, %v1897_v1 }
 0xa49   :  { %v1907_v3 = vadd.f32 %v1903_v0, %v1720_v51 }
 0xa4a   :  { %v1906_v4 = vadd.f32 %v1898_v2, %v1719_v49 }
 0xa4b   :  { %v1911_v5 = vsel %vm150_vm4, %v1907_v3, 0.0 }
 0xa4c   :  { %1912 = vadd.xlane.f32.xlu0 %v1911_v5  ;;  %v1908_v6 = vsel %vm150_vm4, %v1906_v4, 0.0 }
 0xa4d   :  { %1909 = vadd.xlane.f32.xlu1 %v1908_v6 }
 0xad9   :  { %v1913_v7 = vpop.xlane.xlu0 %1912 }
 0xada   :  { %v1915_v35 = vmul.f32 0.03125, %v1913_v7  ;;  %v1910_v39 = vpop.xlane.xlu1 %1909 }
 0xadb   :  { %v1914_v8 = vmul.f32 0.03125, %v1910_v39 }
 0xadc   :  { %v1917_v9 = vsub.f32 %v1907_v3, %v1915_v35 }
 0xadd   :  { %v1916_v10 = vsub.f32 %v1906_v4, %v1914_v8 }
 0xade   :  { %v1919_v11 = vmul.f32 %v1917_v9, %v1917_v9 }
 0xadf   :  { %v1918_v12 = vmul.f32 %v1916_v10, %v1916_v10 }
 0xae0   :  { %v1923_v13 = vsel %vm150_vm4, %v1919_v11, 0.0 }
 0xae1   :  { %1924 = vadd.xlane.f32.xlu0 %v1923_v13  ;;  %v1920_v14 = vsel %vm150_vm4, %v1918_v12, 0.0 }
 0xae2   :  { %1921 = vadd.xlane.f32.xlu1 %v1920_v14 }
 0xb6e   :  { %v1925_v20 = vpop.xlane.xlu0 %1924 }
 0xb6f   :  { %v1927_v21 = vmul.f32 0.03125, %v1925_v20  ;;  %v1922_v22 = vpop.xlane.xlu1 %1921 }
 0xb70   :  { %v1926_v23 = vmul.f32 0.03125, %v1922_v22 }
 0xb71   :  { %v1929_v24 = vadd.f32 1e-05, %v1927_v21 }
 0xb72   :  { %v1928_v25 = vadd.f32 1e-05, %v1926_v23 }
 0xb73   :  { %4449 = vrsqrt.f32 %v1929_v24 }
 0xb74   :  { %4451 = vrsqrt.f32 %v1928_v25 }
 0xb7d   :  { %v4450_v28 = vpop.eup %4449 }
 0xb7e   :  { %v4452_v30 = vpop.eup %4451  ;;  %v1933_v31 = vmul.f32 %v4450_v28, %v1917_v9 }
 0xb7f   :  { %v1932_v32 = vmul.f32 %v4452_v30, %v1916_v10 }
 0xb80   :  { %v1939_v34 = vmul.f32 %v3835_v29, %v1933_v31 }
 0xb81   :  { %v1938_v36 = vmul.f32 %v3835_v29, %v1932_v32 }
 0xb82   :  { %v4909_v38 = vadd.f32 %v3836_v33, %v1939_v34 }
 0xb83   :  { %v4907_v37 = vadd.f32 %v3836_v33, %v1938_v36 }
 0xb85   :  { %4183 = vmatprep.mubr.msk.f32.mxu1 %vm150_vm4, %v4907_v37 }
 0xb86   :  { %4184 = vmatmul.mubr.msk.f32.vlgmr.msra.gmra.mrb[24].mxu1 %vm150_vm4, %v4909_v38 }
 0xb87   :  { %4188 = vmatprep.mubr.msk.f32.mxu1 %vm4519_vm5, %v4518_v19 }
 0xc59   :  { %v4185_v41 = vpop.f32.mrb[24].mxu1 }
 0xc5a   :  { %v4920_v42 = vadd.f32 %v4185_v41, %v3841_v40  ;;  %v2035_v43 = vpop.f32.mrb[25].mxu1 }
 0xc5b   :  { %v4922_v44 = vadd.f32 %v3841_v40, %v2035_v43 }
 0xc5c   :  { %2048 = vrot.lane.b32.xlu0 %v4920_v42, %s4521_s28 }
 0xc5d   :  { %2046 = vrot.lane.b32.xlu1 %v4922_v44, %s4521_s28 }
 0xc60   :  { %2054 = vrot.lane.b32.xlu0 %v4922_v44, %s4522_s29 }
 0xc61   :  { %2050 = vrot.lane.b32.xlu1 %v4922_v44, %s4520_s27 }
 0xc64   :  { %2058 = vrot.lane.b32.xlu0 %v4922_v44, %s4523_s30 }
 0xc65   :  { %2052 = vrot.lane.b32.xlu1 %v4920_v42, %s4520_s27 }
 0xc69   :  { %2056 = vrot.lane.b32.xlu1 %v4920_v42, %s4522_s29 }
 0xc6d   :  { %2134 = vrot.lane.b32.xlu1 %v4920_v42, %s4523_s30 }
 0xcce   :  { %v4940_v45 = vpop.permute.xlu0 %2048 }
 0xccf   :  { %2286 = vrot.lane.b32.xlu1 %v4940_v45, %s4523_s30  ;;  %v4944_v46 = vpop.permute.xlu1 %2046 }
 0xcd0   :  { %2210 = vrot.lane.b32.xlu0 %v4944_v46, %s4523_s30 }
 0xcd2   :  { %v4948_v47 = vpop.permute.xlu0 %2054 }
 0xcd3   :  { %v4950_v48 = vpop.permute.xlu1 %2050 }
 0xcd4   :  { %2362 = vrot.lane.b32.xlu0 %v4950_v48, %s4523_s30 }
 0xcd6   :  { %v2059_v49 = vpop.permute.xlu0 %2058 }
 0xcd7   :  { %4187 = vmatpush3.xpose.msk.msra.mxu1 %vm248_vm6, %v2059_v49  ;;  %v4955_v50 = vpop.permute.xlu1 %2052 }
 0xcd8   :  { %2514 = vrot.lane.b32.xlu0 %v4948_v47, %s4523_s30  ;;  %2438 = vrot.lane.b32.xlu1 %v4955_v50, %s4523_s30 }
 0xcd9   :  { %4191 = vmatprep.subr.mxu1 %v4518_v19 }
 0xcda   :  { %4189 = vmatmul.mubr.msk.f32.vlgmr.msra.gmra.mrb[26].mxu1 %vm248_vm6, %v4922_v44 }
 0xcdb   :  { %v4964_v51 = vpop.permute.xlu1 %2056  ;;  %4193 = vmatprep.mubr.msk.f32.mxu1 %vm4519_vm5, %v4518_v19 }
 0xcdc   :  { %2590 = vrot.lane.b32.xlu1 %v4964_v51, %s4523_s30 }
 0xcdf   :  { %v2135_v52 = vpop.permute.xlu1 %2134 }
 0xce0   :  { %4192 = vmatpush3.xpose.msk.msra.mxu1 %vm248_vm6, %v2135_v52 }
 0xce1   :  { %4201 = vmatprep.subr.mxu1 %v4518_v19 }
 0xce3   :  { %4194 = vmatmul.mubr.msk.f32.vlgmr.msra.gmra.mrb[28].mxu1 %vm248_vm6, %v4920_v42 }
 0xce4   :  { %4203 = vmatprep.mubr.msk.f32.mxu1 %vm4519_vm5, %v4518_v19 }
 0xd41   :  { %v2287_v53 = vpop.permute.xlu1 %2286 }
 0xd42   :  { %v2211_v54 = vpop.permute.xlu0 %2210  ;;  %4202 = vmatpush3.xpose.msk.msra.mxu1 %vm248_vm6, %v2287_v53 }
 0xd43   :  { %4197 = vmatpush3.xpose.msk.msra.mxu0 %vm248_vm6, %v2211_v54  ;;  %4211 = vmatprep.subr.mxu1 %v4518_v19 }
 0xd44   :  { %4206 = vmatprep.subr.mxu0 %v4518_v19 }
 0xd45   :  { %4204 = vmatmul.mubr.msk.f32.vlgmr.msra.gmra.mrb[30].mxu1 %vm248_vm6, %v4940_v45 }
 0xd46   :  { %4199 = vmatmul.mubr.msk.f32.vlgmr.msra.gmra.mrb[18].mxu0 %vm248_vm6, %v4944_v46  ;;  %v2363_v55 = vpop.permute.xlu0 %2362  ;;  %4213 = vmatprep.mubr.msk.f32.mxu1 %vm4519_vm5, %v4518_v19 }
 0xd47   :  { %4207 = vmatpush3.xpose.msk.msra.mxu0 %vm248_vm6, %v2363_v55  ;;  %4208 = vmatprep.mubr.msk.f32.mxu0 %vm4519_vm5, %v4518_v19 }
 0xd48   :  { %4216 = vmatprep.subr.mxu0 %v4518_v19 }
 0xd4a   :  { %4209 = vmatmul.mubr.msk.f32.vlgmr.msra.gmra.mrb[20].mxu0 %vm248_vm6, %v4950_v48  ;;  %v2515_v56 = vpop.permute.xlu0 %2514  ;;  %v2439_v57 = vpop.permute.xlu1 %2438 }
 0xd4b   :  { %4212 = vmatpush3.xpose.msk.msra.mxu1 %vm248_vm6, %v2439_v57  ;;  %4217 = vmatpush3.xpose.msk.msra.mxu0 %vm248_vm6, %v2515_v56 }
 0xd4c   :  { %4218 = vmatprep.mubr.msk.f32.mxu0 %vm4519_vm5, %v4518_v19  ;;  %4221 = vmatprep.subr.mxu1 %v4518_v19 }
 0xd4d   :  { %4226 = vmatprep.subr.mxu0 %v4518_v19 }
 0xd4e   :  { %4214 = vmatmul.mubr.msk.f32.vlgmr.msra.gmra.mrb[32].mxu1 %vm248_vm6, %v4955_v50  ;;  %4219 = vmatmul.mubr.msk.f32.vlgmr.msra.gmra.mrb[22].mxu0 %vm248_vm6, %v4948_v47  ;;  %v2591_v58 = vpop.permute.xlu1 %2590 }
 0xd4f   :  { %4222 = vmatpush3.xpose.msk.msra.mxu1 %vm248_vm6, %v2591_v58  ;;  %4223 = vmatprep.mubr.msk.f32.mxu1 %vm4519_vm5, %v4518_v19 }
 0xd50   :  { %4231 = vmatprep.subr.mxu1 %v4518_v19  ;;  %4228 = vmatprep.mubr.msk.f32.mxu0 %vm4519_vm5, %v4518_v19 }
 0xd52   :  { %4224 = vmatmul.mubr.msk.f32.vlgmr.msra.gmra.mrb[34].mxu1 %vm248_vm6, %v4964_v51 }
 0xd53   :  { %4233 = vmatprep.mubr.msk.f32.mxu1 %vm4519_vm5, %v4518_v19 }
 0xdad   :  { %v2130_v59 = vpop.f32.mrb[26].mxu1 }
 0xdae   :  { %v2666_v60 = vmul.f32 0.35355338, %v2130_v59  ;;  %v4190_v61 = vpop.f32.mrb[27].mxu1 }
 0xdb0   :  { %v2674_v62 = vsel %vm248_vm6, %v2666_v60, -inf }
 0xdb1   :  { %2675 = vmax.xlane.f32.xlu0 %v2674_v62 }
 0xdb6   :  { %v2206_v63 = vpop.f32.mrb[28].mxu1 }
 0xdb7   :  { %v2667_v0 = vmul.f32 0.35355338, %v2206_v63  ;;  %v4195_v1 = vpop.f32.mrb[29].mxu1 }
 0xdb9   :  { %v2677_v2 = vsel %vm248_vm6, %v2667_v0, -inf }
 0xdba   :  { %2678 = vmax.xlane.f32.xlu1 %v2677_v2 }
 0xe18   :  { %v2358_v3 = vpop.f32.mrb[30].mxu1 }
 0xe19   :  { %v2282_v4 = vpop.f32.mrb[18].mxu0  ;;  %v4205_v5 = vpop.f32.mrb[31].mxu1  ;;  %v2669_v35 = vmul.f32 0.35355338, %v2358_v3 }
 0xe1a   :  { %v2668_v6 = vmul.f32 0.35355338, %v2282_v4  ;;  %v4200_v7 = vpop.f32.mrb[19].mxu0 }
 0xe1b   :  { %v2683_v12 = vsel %vm248_vm6, %v2669_v35, -inf }
 0xe1c   :  { %v2680_v39 = vsel %vm248_vm6, %v2668_v6, -inf }
 0xe1d   :  { %2681 = vmax.xlane.f32.xlu0 %v2680_v39  ;;  %v2434_v8 = vpop.f32.mrb[20].mxu0 }
 0xe1e   :  { %v2670_v9 = vmul.f32 0.35355338, %v2434_v8  ;;  %v4210_v10 = vpop.f32.mrb[21].mxu0 }
 0xe20   :  { %v2686_v11 = vsel %vm248_vm6, %v2670_v9, -inf }
 0xe21   :  { %v2586_v13 = vpop.f32.mrb[22].mxu0  ;;  %2687 = vmax.xlane.f32.xlu1 %v2686_v11  ;;  %2684 = vmax.xlane.f32.xlu0 %v2683_v12  ;;  %v2510_v14 = vpop.f32.mrb[32].mxu1 }
 0xe22   :  { %v2672_v15 = vmul.f32 0.35355338, %v2586_v13  ;;  %v2671_v16 = vmul.f32 0.35355338, %v2510_v14  ;;  %v4215_v26 = vpop.f32.mrb[33].mxu1  ;;  %v4220_v27 = vpop.f32.mrb[23].mxu0 }
 0xe24   :  { %v2692_v17 = vsel %vm248_vm6, %v2672_v15, -inf  ;;  %v2689_v18 = vsel %vm248_vm6, %v2671_v16, -inf }
 0xe25   :  { %2693 = vmax.xlane.f32.xlu1 %v2692_v17  ;;  %2690 = vmax.xlane.f32.xlu0 %v2689_v18  ;;  %v2662_v20 = vpop.f32.mrb[34].mxu1 }
 0xe26   :  { %v2673_v21 = vmul.f32 0.35355338, %v2662_v20  ;;  %v4225_v22 = vpop.f32.mrb[35].mxu1 }
 0xe28   :  { %v2695_v23 = vsel %vm248_vm6, %v2673_v21, -inf }
 0xe29   :  { %2696 = vmax.xlane.f32.xlu0 %v2695_v23 }
 0xe36   :  { %2762 = vrot.lane.b32.xlu1 %v4922_v44, %s4524_s8 }
 0xe3a   :  { %2914 = vrot.lane.b32.xlu1 %v4944_v46, %s4524_s8 }
 0xe3e   :  { %2990 = vrot.lane.b32.xlu1 %v4940_v45, %s4524_s8  ;;  %v2676_v28 = vpop.xlane.xlu0 %2675 }
 0xe3f   :  { %2838 = vrot.lane.b32.xlu0 %v4920_v42, %s4524_s8  ;;  %v2698_v29 = vsub.f32 %v2666_v60, %v2676_v28 }
 0xe41   :  { %v2706_v31 = vmul.f32 1.442695, %v2698_v29 }
 0xe42   :  { %3142 = vrot.lane.b32.xlu1 %v4955_v50, %s4524_s8 }
 0xe43   :  { %3066 = vrot.lane.b32.xlu0 %v4950_v48, %s4524_s8 }
 0xe47   :  { %v2679_v24 = vpop.xlane.xlu1 %2678 }
 0xe48   :  { %v2699_v25 = vsub.f32 %v2667_v0, %v2679_v24 }
 0xe4a   :  { %v2708_v30 = vmul.f32 1.442695, %v2699_v25 }
 0xe4c   :  { %4453 = vpow2.f32 %v2708_v30 }
 0xe4d   :  { %4455 = vpow2.f32 %v2706_v31 }
 0xe56   :  { %v5032_v32 = vpop.eup %4453 }
 0xe57   :  { %v2725_v33 = vsel %vm248_vm6, %v5032_v32, 0.0  ;;  %v5036_v34 = vpop.eup %4455 }
 0xe58   :  { %v2722_v36 = vsel %vm248_vm6, %v5036_v34, 0.0 }
 0xe62   :  { %2726 = vadd.xlane.f32.xlu0 %v2725_v33 }
 0xe66   :  { %2723 = vadd.xlane.f32.xlu1 %v2722_v36 }
 0xeaa   :  { %v2682_v40 = vpop.xlane.xlu0 %2681 }
 0xeab   :  { %v2700_v41 = vsub.f32 %v2668_v6, %v2682_v40 }
 0xead   :  { %v2710_v42 = vmul.f32 1.442695, %v2700_v41 }
 0xeae   :  { %v2685_v43 = vpop.xlane.xlu0 %2684  ;;  %v2688_v44 = vpop.xlane.xlu1 %2687 }
 0xeaf   :  { %4457 = vpow2.f32 %v2710_v42  ;;  %v2701_v45 = vsub.f32 %v2669_v35, %v2685_v43  ;;  %v2702_v46 = vsub.f32 %v2670_v9, %v2688_v44 }
 0xeb1   :  { %v2712_v48 = vmul.f32 1.442695, %v2701_v45  ;;  %v2714_v49 = vmul.f32 1.442695, %v2702_v46  ;;  %v3868_v45 = vld [vmem:[%s5199_s3 + $0x20] sm:$0xff]  ;;  %v3869_v46 = vld [vmem:[%s5199_s3 + $0x28] sm:$0xff] }
 0xeb2   :  { %v2691_v50 = vpop.xlane.xlu0 %2690  ;;  %v2694_v52 = vpop.xlane.xlu1 %2693 }
 0xeb3   :  { %4459 = vpow2.f32 %v2712_v48  ;;  %v2703_v53 = vsub.f32 %v2671_v16, %v2691_v50  ;;  %v2704_v54 = vsub.f32 %v2672_v15, %v2694_v52  ;;  %v4367_v48 = vpack.c.bf16 %v3869_v46, %v3868_v45 }
 0xeb4   :  { %4461 = vpow2.f32 %v2714_v49  ;;  %v3871_v49 = vld [vmem:[%s5199_s3 + $0x38] sm:$0xff] }
 0xeb5   :  { %v2716_v55 = vmul.f32 1.442695, %v2703_v53  ;;  %v2718_v56 = vmul.f32 1.442695, %v2704_v54 }
 0xeb6   :  { %v2697_v57 = vpop.xlane.xlu0 %2696  ;;  %v2763_v58 = vpop.permute.xlu1 %2762 }
 0xeb7   :  { %4463 = vpow2.f32 %v2716_v55  ;;  %v2705_v59 = vsub.f32 %v2673_v21, %v2697_v57  ;;  %4227 = vmatpush3.msra.mxu0 %v2763_v58 }
 0xeb8   :  { %4465 = vpow2.f32 %v2718_v56  ;;  %4236 = vmatprep.subr.mxu0 %v4518_v19 }
 0xeb9   :  { %v4458_v60 = vpop.eup %4457  ;;  %v2720_v61 = vmul.f32 1.442695, %v2705_v59 }
 0xeba   :  { %v2839_v62 = vpop.permute.xlu0 %2838  ;;  %v2728_v63 = vsel %vm248_vm6, %v4458_v60, 0.0  ;;  %v2915_v8 = vpop.permute.xlu1 %2914 }
 0xebb   :  { %4467 = vpow2.f32 %v2720_v61  ;;  %2729 = vadd.xlane.f32.xlu1 %v2728_v63  ;;  %4232 = vmatpush3.msra.mxu1 %v2839_v62 }
 0xebc   :  { %4241 = vmatprep.subr.mxu1 %v4518_v19 }
 0xebd   :  { %v4460_v0 = vpop.eup %4459 }
 0xebe   :  { %v4462_v1 = vpop.eup %4461  ;;  %v2731_v2 = vsel %vm248_vm6, %v4460_v0, 0.0  ;;  %v2991_v9 = vpop.permute.xlu1 %2990 }
 0xebf   :  { %2732 = vadd.xlane.f32.xlu0 %v2731_v2  ;;  %v2734_v3 = vsel %vm248_vm6, %v4462_v1, 0.0  ;;  %v3067_v10 = vpop.permute.xlu0 %3066 }
 0xec0   :  { %2735 = vadd.xlane.f32.xlu1 %v2734_v3 }
 0xec1   :  { %v4464_v4 = vpop.eup %4463 }
 0xec2   :  { %v4466_v5 = vpop.eup %4465  ;;  %v2737_v6 = vsel %vm248_vm6, %v4464_v4, 0.0  ;;  %v3143_v11 = vpop.permute.xlu1 %3142 }
 0xec3   :  { %2738 = vadd.xlane.f32.xlu0 %v2737_v6  ;;  %v2740_v7 = vsel %vm248_vm6, %v4466_v5, 0.0 }
 0xec4   :  { %2741 = vadd.xlane.f32.xlu1 %v2740_v7 }
 0xec5   :  { %v5047_v35 = vpop.eup %4467 }
 0xec6   :  { %v2743_v39 = vsel %vm248_vm6, %v5047_v35, 0.0 }
 0xec7   :  { %2744 = vadd.xlane.f32.xlu0 %v2743_v39 }
 0xed5   :  { %3294 = vrot.lane.b32.xlu1 %v4964_v51, %s4524_s8 }
 0xedd   :  { %3218 = vrot.lane.b32.xlu0 %v4948_v47, %s4524_s8 }
 0xeef   :  { %v2727_v12 = vpop.xlane.xlu0 %2726 }
 0xef0   :  { %4469 = vrcp.f32 %v2727_v12 }
 0xef3   :  { %v2724_v13 = vpop.xlane.xlu1 %2723 }
 0xef4   :  { %4471 = vrcp.f32 %v2724_v13 }
 0xefa   :  { %v4470_v14 = vpop.eup %4469 }
 0xefb   :  { %v2749_v15 = vmul.f32 %v4470_v14, %v5032_v32 }
 0xefd   :  { %4234 = vmatmul.mubr.msk.f32.vlgmr.msra.gmra.mrb[36].mxu1 %vm248_vm6, %v2749_v15 }
 0xefe   :  { %v4472_v16 = vpop.eup %4471  ;;  %4242 = vmatpush3.msra.mxu1 %v2991_v9  ;;  %4243 = vmatprep.mubr.msk.f32.mxu1 %vm4519_vm5, %v4518_v19 }
 0xeff   :  { %v2747_v47 = vmul.f32 %v4472_v16, %v5036_v34  ;;  %4251 = vmatprep.subr.mxu1 %v4518_v19 }
 0xf01   :  { %4229 = vmatmul.mubr.msk.f32.vlgmr.msra.gmra.mrb[24].mxu0 %vm248_vm6, %v2747_v47 }
 0xf02   :  { %4237 = vmatpush3.msra.mxu0 %v2915_v8  ;;  %4238 = vmatprep.mubr.msk.f32.mxu0 %vm4519_vm5, %v4518_v19 }
 0xf03   :  { %4246 = vmatprep.subr.mxu0 %v4518_v19 }
 0xf48   :  { %v2730_v51 = vpop.xlane.xlu1 %2729 }
 0xf49   :  { %4473 = vrcp.f32 %v2730_v51 }
 0xf4c   :  { %v2733_v26 = vpop.xlane.xlu0 %2732 }
 0xf4d   :  { %4475 = vrcp.f32 %v2733_v26  ;;  %v2736_v27 = vpop.xlane.xlu1 %2735 }
 0xf4e   :  { %4477 = vrcp.f32 %v2736_v27 }
 0xf50   :  { %v2739_v17 = vpop.xlane.xlu0 %2738 }
 0xf51   :  { %4479 = vrcp.f32 %v2739_v17  ;;  %v2742_v18 = vpop.xlane.xlu1 %2741 }
 0xf52   :  { %4481 = vrcp.f32 %v2742_v18 }
 0xf53   :  { %v4474_v20 = vpop.eup %4473 }
 0xf54   :  { %v2751_v21 = vmul.f32 %v4474_v20, %v4458_v60  ;;  %v2745_v22 = vpop.xlane.xlu0 %2744 }
 0xf55   :  { %4483 = vrcp.f32 %v2745_v22  ;;  %v3295_v34 = vpop.permute.xlu1 %3294 }
 0xf56   :  { %4239 = vmatmul.mubr.msk.f32.vlgmr.msra.gmra.mrb[26].mxu0 %vm248_vm6, %v2751_v21 }
 0xf57   :  { %v4476_v23 = vpop.eup %4475  ;;  %4247 = vmatpush3.msra.mxu0 %v3067_v10  ;;  %4248 = vmatprep.mubr.msk.f32.mxu0 %vm4519_vm5, %v4518_v19  ;;  %v3872_v10 = vld [vmem:[%s5202_s6 + $0x9] ss:$0 sm:$0xff] }
 0xf58   :  { %v4478_v24 = vpop.eup %4477  ;;  %v2753_v25 = vmul.f32 %v4476_v23, %v4460_v0  ;;  %4256 = vmatprep.subr.mxu0 %v4518_v19  ;;  %v3219_v29 = vpop.permute.xlu0 %3218 }
 0xf59   :  { %v2755_v28 = vmul.f32 %v4478_v24, %v4462_v1 }
 0xf5a   :  { %4244 = vmatmul.mubr.msk.f32.vlgmr.msra.gmra.mrb[38].mxu1 %vm248_vm6, %v2753_v25  ;;  %v3878_v25 = vld [vmem:[%s5200_s4 + $0x28] sm:$0xff] }
 0xf5b   :  { %v4480_v30 = vpop.eup %4479  ;;  %4249 = vmatmul.mubr.msk.f32.vlgmr.msra.gmra.mrb[28].mxu0 %vm248_vm6, %v2755_v28  ;;  %4252 = vmatpush3.msra.mxu1 %v3143_v11 }
 0xf5c   :  { %v4482_v31 = vpop.eup %4481  ;;  %v2757_v32 = vmul.f32 %v4480_v30, %v4464_v4  ;;  %4257 = vmatpush3.msra.mxu0 %v3219_v29  ;;  %4253 = vmatprep.mubr.msk.f32.mxu1 %vm4519_vm5, %v4518_v19  ;;  %v3879_v29 = vld [vmem:[%s5200_s4 + $0x30] sm:$0xff]  ;;  %v3880_v30 = vld [vmem:[%s5200_s4 + $0x38] sm:$0xff] }
 0xf5d   :  { %v2759_v33 = vmul.f32 %v4482_v31, %v4466_v5  ;;  %4258 = vmatprep.mubr.msk.f32.mxu0 %vm4519_vm5, %v4518_v19  ;;  %4261 = vmatprep.subr.mxu1 %v4518_v19  ;;  %v4379_v31 = vpack.c.bf16 %v3880_v30, %v3879_v29  ;;  %v3895_v29 = vld [vmem:[%s5202_s6 + $0xe] ss:$0 sm:$0xff] }
 0xf5e   :  { %4254 = vmatmul.mubr.msk.f32.vlgmr.msra.gmra.mrb[40].mxu1 %vm248_vm6, %v2757_v32  ;;  %4368 = vmatprep.subr.bf16.mxu0 %v4367_v48  ;;  %v3884_v32 = vld [vmem:[%s5201_s5 + $0x40] sm:$0xff] }
 0xf5f   :  { %v4484_v36 = vpop.eup %4483  ;;  %4259 = vmatmul.mubr.msk.f32.vlgmr.msra.gmra.mrb[30].mxu0 %vm248_vm6, %v2759_v33  ;;  %4262 = vmatpush3.msra.mxu1 %v3295_v34  ;;  %v3885_v33 = vld [vmem:[%s5201_s5 + $0x48] sm:$0xff]  ;;  %v3886_v34 = vld [vmem:[%s5201_s5 + $0x50] sm:$0xff] }
 0xf60   :  { %v2761_v40 = vmul.f32 %v4484_v36, %v5047_v35  ;;  %4263 = vmatprep.mubr.msk.f32.mxu1 %vm4519_vm5, %v4518_v19  ;;  %4370 = vmatpush3.bf16.msra.mxu0 %v4367_v48  ;;  %v3870_v19 = vld [vmem:[%s5199_s3 + $0x30] sm:$0xff]  ;;  %v4383_v36 = vpack.c.bf16 %v3885_v33, %v3884_v32  ;;  %v3896_v33 = vld [vmem:[%s5202_s6 + $0xf] ss:$0 sm:$0xff] }
 0xf61   :  { %v4371_v50 = vpack.c.bf16 %v3871_v49, %v3870_v19 }
 0xf62   :  { %4264 = vmatmul.mubr.msk.f32.vlgmr.msra.gmra.mrb[42].mxu1 %vm248_vm6, %v2761_v40  ;;  %v3887_v40 = vld [vmem:[%s5201_s5 + $0x58] sm:$0xff] }
 0xf63   :  { %4372 = vmatprep.subr.bf16.mxu0 %v4371_v50 }
 0xf64   :  { %4374 = vmatpush3.bf16.msra.mxu0 %v4371_v50 }
 0xf65   :  { %4384 = vmatprep.subr.bf16.mxu0 %v4383_v36 }
 0xfd0   :  { %v2910_v41 = vpop.f32.mrb[36].mxu1 }
 0xfd1   :  { %v4235_v42 = vpop.f32.mrb[37].mxu1 }
 0xfd2   :  { %v3888_v42 = vld [vmem:[%s5201_s5 + $0x60] sm:$0xff] }
 0xfd4   :  { %v2834_v43 = vpop.f32.mrb[24].mxu0 }
 0xfd5   :  { %v4230_v44 = vpop.f32.mrb[25].mxu0 }
0x1029   :  { %v2986_v52 = vpop.f32.mrb[26].mxu0 }
0x102a   :  { %3372 = vrot.lane.b32.xlu0 %v2986_v52, %s4525_s17  ;;  %v4240_v53 = vpop.f32.mrb[27].mxu0 }
0x102b   :  { %v3875_v53 = vld [vmem:[%s5202_s6 + $0xa] ss:$0 sm:$0xff] }
0x102d   :  { %v3062_v54 = vpop.f32.mrb[38].mxu1 }
0x102e   :  { %v3138_v55 = vpop.f32.mrb[28].mxu0  ;;  %3374 = vrot.lane.b32.xlu1 %v3062_v54, %s4525_s17  ;;  %v4245_v56 = vpop.f32.mrb[39].mxu1 }
0x102f   :  { %3380 = vrot.lane.b32.xlu0 %v3138_v55, %s4526_s18  ;;  %v4250_v57 = vpop.f32.mrb[29].mxu0  ;;  %v3876_v55 = vld [vmem:[%s5202_s6 + $0xb] ss:$0 sm:$0xff] }
0x1031   :  { %v3214_v58 = vpop.f32.mrb[40].mxu1 }
0x1032   :  { %v3290_v59 = vpop.f32.mrb[30].mxu0  ;;  %3382 = vrot.lane.b32.xlu1 %v3214_v58, %s4526_s18  ;;  %v4255_v60 = vpop.f32.mrb[41].mxu1 }
0x1033   :  { %3388 = vrot.lane.b32.xlu0 %v3290_v59, %s4527_s19  ;;  %v4260_v61 = vpop.f32.mrb[31].mxu0 }
0x1035   :  { %v3366_v62 = vpop.f32.mrb[42].mxu1 }
0x1036   :  { %3390 = vrot.lane.b32.xlu1 %v3366_v62, %s4527_s19  ;;  %v4265_v63 = vpop.f32.mrb[43].mxu1  ;;  %v3890_v62 = vld [vmem:[%s5201_s5 + $0x70] sm:$0xff] }
0x1037   :  { %v3891_v63 = vld [vmem:[%s5201_s5 + $0x78] sm:$0xff] }
0x109c   :  { %v3373_v0 = vpop.permute.xlu0 %3372 }
0x109d   :  { %v3394_v3 = vsel %vm248_vm6, %v2834_v43, %v3373_v0  ;;  %v3889_v43 = vld [vmem:[%s5201_s5 + $0x68] sm:$0xff]  ;;  %v4395_v0 = vpack.c.bf16 %v3891_v63, %v3890_v62 }
0x109e   :  { %v4391_v44 = vpack.c.bf16 %v3889_v43, %v3888_v42 }
0x10a0   :  { %v3375_v1 = vpop.permute.xlu1 %3374 }
0x10a1   :  { %v3381_v2 = vpop.permute.xlu0 %3380  ;;  %v3395_v35 = vsel %vm248_vm6, %v2910_v41, %v3375_v1  ;;  %v4387_v41 = vpack.c.bf16 %v3887_v40, %v3886_v34  ;;  %v3881_v1 = vld [vmem:[%s5202_s6 + $0xc] ss:$0 sm:$0xff] }
0x10a2   :  { %v3396_v5 = vsel %vm1585_vm7, %v3394_v3, %v3381_v2 }
0x10a4   :  { %v3383_v4 = vpop.permute.xlu1 %3382 }
0x10a5   :  { %v3389_v6 = vpop.permute.xlu0 %3388  ;;  %v3397_v39 = vsel %vm1585_vm7, %v3395_v35, %v3383_v4  ;;  %v3892_v35 = vld [vmem:[%s5202_s6 + $0xd] ss:$0 sm:$0xff] }
0x10a6   :  { %v3398_v7 = vsel %vm1588_vm8, %v3396_v5, %v3389_v6 }
0x10a7   :  { %4274 = vmatprep.mubr.msk.f32.mxu0 %vm150_vm4, %v3398_v7 }
0x10a8   :  { %v3391_v8 = vpop.permute.xlu1 %3390 }
0x10a9   :  { %v3399_v9 = vsel %vm1588_vm8, %v3397_v39, %v3391_v8 }
0x10aa   :  { %4275 = vmatmul.mubr.msk.f32.vlgmr.msra.gmra.mrb[32].mxu0 %vm150_vm4, %v3399_v9 }
0x10ab   :  { %4386 = vmatpush3.bf16.msra.mxu0 %v4383_v36 }
0x10ac   :  { %4388 = vmatprep.subr.bf16.mxu0 %v4387_v41 }
0x10af   :  { %4390 = vmatpush3.bf16.msra.mxu0 %v4387_v41 }
0x10b0   :  { %4392 = vmatprep.subr.bf16.mxu0 %v4391_v44 }
0x10b3   :  { %4394 = vmatpush3.bf16.msra.mxu0 %v4391_v44 }
0x10b4   :  { %4396 = vmatprep.subr.bf16.mxu0 %v4395_v0 }
0x10b7   :  { %4398 = vmatpush3.bf16.msra.mxu0 %v4395_v0 }
0x117d   :  { %v4276_v11 = vpop.f32.mrb[32].mxu0 }
0x117e   :  { %v3487_v12 = vadd.f32 %v4276_v11, %v3872_v10  ;;  %v3481_v13 = vpop.f32.mrb[33].mxu0 }
0x117f   :  { %v3482_v14 = vadd.f32 %v3872_v10, %v3481_v13 }
0x1180   :  { %v3491_v15 = vadd.f32 %v3487_v12, %v4909_v38 }
0x1181   :  { %v3490_v16 = vadd.f32 %v3482_v14, %v4907_v37  ;;  %v3877_v37 = vld [vmem:[%s5200_s4 + $0x20] sm:$0xff] }
0x1182   :  { %v3495_v47 = vsel %vm150_vm4, %v3491_v15, 0.0  ;;  %v4375_v28 = vpack.c.bf16 %v3878_v25, %v3877_v37 }
0x1183   :  { %3496 = vadd.xlane.f32.xlu1 %v3495_v47  ;;  %v3492_v51 = vsel %vm150_vm4, %v3490_v16, 0.0 }
0x1184   :  { %3493 = vadd.xlane.f32.xlu0 %v3492_v51  ;;  %4376 = vmatprep.subr.bf16.mxu1 %v4375_v28 }
0x1185   :  { %4378 = vmatpush3.bf16.msra.mxu1 %v4375_v28 }
0x1186   :  { %4380 = vmatprep.subr.bf16.mxu1 %v4379_v31 }
0x1189   :  { %4382 = vmatpush3.bf16.msra.mxu1 %v4379_v31 }
0x1210   :  { %v3497_v26 = vpop.xlane.xlu1 %3496 }
0x1211   :  { %v3499_v27 = vmul.f32 0.03125, %v3497_v26  ;;  %v3494_v17 = vpop.xlane.xlu0 %3493 }
0x1212   :  { %v3498_v18 = vmul.f32 0.03125, %v3494_v17 }
0x1213   :  { %v3501_v20 = vsub.f32 %v3491_v15, %v3499_v27 }
0x1214   :  { %v3500_v21 = vsub.f32 %v3490_v16, %v3498_v18 }
0x1215   :  { %v3503_v24 = vmul.f32 %v3501_v20, %v3501_v20 }
0x1216   :  { %v3502_v22 = vmul.f32 %v3500_v21, %v3500_v21 }
0x1217   :  { %v3507_v38 = vsel %vm150_vm4, %v3503_v24, 0.0 }
0x1218   :  { %v3504_v23 = vsel %vm150_vm4, %v3502_v22, 0.0 }
0x1219   :  { %3505 = vadd.xlane.f32.xlu0 %v3504_v23 }
0x121d   :  { %3508 = vadd.xlane.f32.xlu0 %v3507_v38 }
0x12a6   :  { %v3506_v45 = vpop.xlane.xlu0 %3505 }
0x12a7   :  { %v3510_v46 = vmul.f32 0.03125, %v3506_v45 }
0x12a9   :  { %v3512_v48 = vadd.f32 1e-05, %v3510_v46 }
0x12aa   :  { %v3509_v19 = vpop.xlane.xlu0 %3508 }
0x12ab   :  { %4485 = vrsqrt.f32 %v3512_v48  ;;  %v3511_v49 = vmul.f32 0.03125, %v3509_v19 }
0x12ad   :  { %v3513_v50 = vadd.f32 1e-05, %v3511_v49 }
0x12af   :  { %4487 = vrsqrt.f32 %v3513_v50 }
0x12b5   :  { %v4486_v52 = vpop.eup %4485 }
0x12b6   :  { %v3516_v54 = vmul.f32 %v4486_v52, %v3500_v21  ;;  %v3756_v52 = vld [vmem:[%s5202_s6 + $0x10] sm:$0x1] }
0x12b8   :  { %v3522_v56 = vmul.f32 %v3875_v53, %v3516_v54 }
0x12b9   :  { %v4488_v57 = vpop.eup %4487 }
0x12ba   :  { %v3517_v58 = vmul.f32 %v4488_v57, %v3501_v20  ;;  %v3528_v59 = vadd.f32 %v3876_v55, %v3522_v56 }
0x12bc   :  { %v3523_v60 = vmul.f32 %v3875_v53, %v3517_v58  ;;  %4285 = vmatprep.mubr.msk.f32.mxu1 %vm150_vm4, %v3528_v59 }
0x12be   :  { %v3529_v61 = vadd.f32 %v3876_v55, %v3523_v60 }
0x12c0   :  { %4286 = vmatmul.mubr.msk.f32.vlgmr.msra.gmra.mrb[44].mxu1 %vm150_vm4, %v3529_v61 }
0x1393   :  { %v4287_v2 = vpop.f32.mrb[44].mxu1 }
0x1394   :  { %v3617_v3 = vadd.f32 %v4287_v2, %v3881_v1  ;;  %v3611_v4 = vpop.f32.mrb[45].mxu1 }
0x1395   :  { %v3612_v5 = vadd.f32 %v3881_v1, %v3611_v4 }
0x1396   :  { %v3621_v7 = vmax.f32 %v3617_v3, 0.0 }
0x1397   :  { %v3620_v6 = vmax.f32 %v3612_v5, 0.0 }
0x1399   :  { %4304 = vmatprep.mubr.msk.f32.mxu0 %vm1824_vm9, %v3620_v6 }
0x139a   :  { %4305 = vmatmul.mubr.msk.f32.vlgmr.msra.gmra.mrb[34].mxu0 %vm1824_vm9, %v3621_v7 }
0x146d   :  { %v4306_v39 = vpop.f32.mrb[34].mxu0 }
0x146e   :  { %v3713_v8 = vadd.f32 %v4306_v39, %v3892_v35  ;;  %v3707_v9 = vpop.f32.mrb[35].mxu0 }
0x146f   :  { %v3708_v10 = vadd.f32 %v3892_v35, %v3707_v9 }
0x1470   :  { %v3717_v11 = vadd.f32 %v3713_v8, %v3529_v61 }
0x1471   :  { %v3716_v12 = vadd.f32 %v3708_v10, %v3528_v59 }
0x1472   :  { %v3721_v13 = vsel %vm150_vm4, %v3717_v11, 0.0 }
0x1473   :  { %3722 = vadd.xlane.f32.xlu0 %v3721_v13  ;;  %v3718_v14 = vsel %vm150_vm4, %v3716_v12, 0.0 }
0x1474   :  { %3719 = vadd.xlane.f32.xlu1 %v3718_v14 }
0x1500   :  { %v3723_v15 = vpop.xlane.xlu0 %3722 }
0x1501   :  { %v3725_v16 = vmul.f32 0.03125, %v3723_v15  ;;  %v3720_v47 = vpop.xlane.xlu1 %3719 }
0x1502   :  { %v3724_v51 = vmul.f32 0.03125, %v3720_v47 }
0x1503   :  { %v3727_v26 = vsub.f32 %v3717_v11, %v3725_v16 }
0x1504   :  { %v3726_v27 = vsub.f32 %v3716_v12, %v3724_v51 }
0x1505   :  { %v3729_v17 = vmul.f32 %v3727_v26, %v3727_v26 }
0x1506   :  { %v3728_v18 = vmul.f32 %v3726_v27, %v3726_v27 }
0x1507   :  { %v3733_v20 = vsel %vm150_vm4, %v3729_v17, 0.0 }
0x1508   :  { %3734 = vadd.xlane.f32.xlu0 %v3733_v20  ;;  %v3730_v21 = vsel %vm150_vm4, %v3728_v18, 0.0 }
0x1509   :  { %3731 = vadd.xlane.f32.xlu1 %v3730_v21 }
0x1595   :  { %v3735_v22 = vpop.xlane.xlu0 %3734 }
0x1596   :  { %v3737_v23 = vmul.f32 0.03125, %v3735_v22  ;;  %v3732_v24 = vpop.xlane.xlu1 %3731 }
0x1597   :  { %v3736_v38 = vmul.f32 0.03125, %v3732_v24 }
0x1598   :  { %v3739_v37 = vadd.f32 1e-05, %v3737_v23 }
0x1599   :  { %v3738_v25 = vadd.f32 1e-05, %v3736_v38 }
0x159a   :  { %4489 = vrsqrt.f32 %v3739_v37 }
0x159b   :  { %4491 = vrsqrt.f32 %v3738_v25 }
0x15a4   :  { %v4490_v28 = vpop.eup %4489 }
0x15a5   :  { %v4492_v30 = vpop.eup %4491  ;;  %v3743_v31 = vmul.f32 %v4490_v28, %v3727_v26 }
0x15a6   :  { %v3742_v32 = vmul.f32 %v4492_v30, %v3726_v27 }
0x15a7   :  { %v3749_v34 = vmul.f32 %v3895_v29, %v3743_v31 }
0x15a8   :  { %v3748_v36 = vmul.f32 %v3895_v29, %v3742_v32 }
0x15a9   :  { %v3755_v40 = vadd.f32 %v3896_v33, %v3749_v34 }
0x15aa   :  { %v3754_v41 = vadd.f32 %v3896_v33, %v3748_v36 }
0x15ab   :  { %v3758_v42 = vsel %vm150_vm4, %v3755_v40, 0.0 }
0x15ac   :  { %v3757_v43 = vsel %vm150_vm4, %v3754_v41, 0.0 }
0x15ad   :  { %v3759_v44 = vadd.f32 %v3758_v42, %v3757_v43 }
0x15af   :  { %v3760_v45 = vrot.slane %v3759_v44, 4 }
0x15b1   :  { %v3761_v46 = vadd.f32 %v3760_v45, %v3759_v44 }
0x15b3   :  { %v3762_v48 = vrot.slane %v3761_v46, 2 }
0x15b5   :  { %v3763_v19 = vadd.f32 %v3762_v48, %v3761_v46 }
0x15b7   :  { %v3764_v49 = vrot.slane %v3763_v19, 1 }
0x15b9   :  { %v3765_v50 = vadd.f32 %v3764_v49, %v3763_v19 }
0x15bb   :  { %v3767_v53 = vmul.f32 0.0625, %v3765_v50 }
0x15bd   :  { %v3768_v54 = vmul.f32 %v3767_v53, %v3756_v52 }
0x15bf   :  { %v3770_v55 = vsel %vm3769_vm10, %v3768_v54, 0.0 }
0x15c0   :  { %3771 = vadd.xlane.f32.xlu1 %v3770_v55 }
0x164d   :  { %v3772_v56 = vpop.xlane.xlu1 %3771 }
0x164e   :  { %v3773_v57 = vadd.f32 %v3772_v56, %v3756_v52 }
0x1650   :  { %3775 = vrot.lane.b32.xlu0 %v3773_v57, %s4528_s25 }
0x16c2   :  { %v3776_v58 = vpop.permute.xlu0 %3775 }
0x16c3   :  { %3779 = vst.msk [vmem:[#allocation2] sm:$0x1] %vm3778_vm11, %v3776_v58 }
0x16c4   :  { %4504 = shalt.err (!%p4501_p4)
}
0x16c5   :  { %s4505_s11 = scalar_lea.hbm %s5203_s7, 16 }
0x16c6   :  { %p4506_p5 = scmp.ne.s32.totalorder %s5203_s7, %s4505_s11  ;;  %p4509_p6 = scmp.lt.u32.totalorder %s4505_s11, %s5203_s7 }
0x16c8   :  { %p4511_p7 = pnand %p4509_p6, %p4506_p5 }
0x16ca   :  { %4514 = shalt.err (!%p4511_p7)
}
0x16cb   :  { %3789 = dma.vmem_to_hbm [thread:$0]  %s3787_s26, 16, %s5203_s7, [#allocation3]  }
0x16cc   :  { %4515 = dma.done.wait [#allocation3], 16  }
0x16cd   :  { %4516 = vsyncadd [#allocation3], 4294967280 }
0x16ce   :  { %3793 = vsyncpa [#allocation3], 1 }

</bundles_post_ra>
